<compile_context>
chip_gen: v7x
topology: tpu7x:2x2x1
jax: 0.10.0
libtpu: 0.0.40
codegen_flags: <defaults>
</compile_context>

<pallas_src>
import functools

import jax
import jax.numpy as jnp
from jax.experimental import pallas as pl
from jax.experimental.pallas import tpu as pltpu


_NEG_BIG = -1e30  # finite "-inf" so padded entries never create inf-inf NaNs


# ----------------------------------------------------------------------------- small helpers
def _round_up(x, m):
    return ((x + m - 1) // m) * m


def _pad_to(x, shape):
    pads = [(0, t - s) for s, t in zip(x.shape, shape)]
    if all(p == (0, 0) for p in pads):
        return x
    return jnp.pad(x, pads)


def _softplus(x):
    return jnp.maximum(x, 0.0) + jnp.log(1.0 + jnp.exp(-jnp.abs(x)))


def _logsumexp_rows(x):
    m = jnp.max(x, axis=1, keepdims=True)
    return jnp.log(jnp.sum(jnp.exp(x - m), axis=1, keepdims=True)) + m


# ----------------------------------------------------------------------------- coarse matching loss
def _coarse_circle_loss_kernel(ref_ref, src_ref, ovl_ref, out_ref,
                               cmax_p, csum_p, ccnt_p, cmax_n, csum_n, ccnt_n, row_acc,
                               *, n, m, tn, pos_thresh, pos_margin, neg_margin,
                               pos_optimal, neg_optimal, log_scale):
    i = pl.program_id(0)

    @pl.when(i == 0)
    def _init():
        cmax_p[...] = jnp.full_like(cmax_p, _NEG_BIG)
        cmax_n[...] = jnp.full_like(cmax_n, _NEG_BIG)
        csum_p[...] = jnp.zeros_like(csum_p)
        csum_n[...] = jnp.zeros_like(csum_n)
        ccnt_p[...] = jnp.zeros_like(ccnt_p)
        ccnt_n[...] = jnp.zeros_like(ccnt_n)
        row_acc[0] = 0.0
        row_acc[1] = 0.0

    ref = ref_ref[...]                      # (TN, C_pad)   native dtype
    src = src_ref[...]                      # (M_pad, C_pad)
    overlaps = ovl_ref[...]                 # (TN, M_pad)   f32
    tn_blk, m_pad = overlaps.shape

    # pairwise_distance(normalized=True): sqrt(clamp(2 - 2 * ref @ src^T, 0))
    sim = jax.lax.dot_general(ref, src, (((1,), (1,)), ((), ())),
                              preferred_element_type=jnp.float32)
    feat_dists = jnp.sqrt(jnp.maximum(2.0 - 2.0 * sim, 0.0))

    # validity of padded rows / columns
    row_ids = i * tn + jax.lax.broadcasted_iota(jnp.int32, (tn_blk, 1), 0)
    col_ids = jax.lax.broadcasted_iota(jnp.int32, (1, m_pad), 1)
    valid_b = (row_ids < n) & (col_ids < m)                     # (TN, M_pad) bool
    valid_f = valid_b.astype(jnp.float32)

    pos_m = jnp.where(overlaps > pos_thresh, 1.0, 0.0) * valid_f
    neg_m = jnp.where(overlaps == 0.0, 1.0, 0.0) * valid_f

    pos_w = (jnp.maximum(feat_dists - 1e5 * (1.0 - pos_m) - pos_optimal, 0.0)
             * jnp.sqrt(overlaps * pos_m))
    neg_w = jnp.maximum(neg_optimal - (feat_dists + 1e5 * (1.0 - neg_m)), 0.0)

    pos_logits = jnp.where(valid_b, log_scale * (feat_dists - pos_margin) * pos_w, _NEG_BIG)
    neg_logits = jnp.where(valid_b, log_scale * (neg_margin - feat_dists) * neg_w, _NEG_BIG)

    # ---- row direction: full logsumexp within this row tile ------------------
    row_mask = jnp.where((jnp.sum(pos_m, axis=1, keepdims=True) > 0.0)
                         & (jnp.sum(neg_m, axis=1, keepdims=True) > 0.0), 1.0, 0.0)
    row_loss = _softplus(_logsumexp_rows(pos_logits) + _logsumexp_rows(neg_logits)) / log_scale
    row_acc[0] = row_acc[0] + jnp.sum(row_loss * row_mask)
    row_acc[1] = row_acc[1] + jnp.sum(row_mask)

    # ---- column direction: online logsumexp across row tiles -----------------
    def _col_update(logits, msk, cmax, csum, ccnt):
        tile_max = jnp.max(logits, axis=0, keepdims=True)        # (1, M_pad)
        m_old = cmax[...]
        m_new = jnp.maximum(m_old, tile_max)
        csum[...] = (csum[...] * jnp.exp(m_old - m_new)
                     + jnp.sum(jnp.exp(logits - m_new), axis=0, keepdims=True))
        cmax[...] = m_new
        ccnt[...] = ccnt[...] + jnp.sum(msk, axis=0, keepdims=True)

    _col_update(pos_logits, pos_m, cmax_p, csum_p, ccnt_p)
    _col_update(neg_logits, neg_m, cmax_n, csum_n, ccnt_n)

    @pl.when(i == pl.num_programs(0) - 1)
    def _finalize():
        lse_p = jnp.log(csum_p[...]) + cmax_p[...]
        lse_n = jnp.log(csum_n[...]) + cmax_n[...]
        col_loss = _softplus(lse_p + lse_n) / log_scale
        col_mask = jnp.where((ccnt_p[...] > 0.0) & (ccnt_n[...] > 0.0), 1.0, 0.0)
        # NaN guards: max(., 1.0) protects empty-correspondence batches.
        loss_col = jnp.sum(col_loss * col_mask) / jnp.maximum(jnp.sum(col_mask), 1.0)
        loss_row = row_acc[0] / jnp.maximum(row_acc[1], 1.0)
        out_ref[0] = 0.5 * (loss_row + loss_col)


def coarse_matching_loss(ref_feats, src_feats, gt_node_corr_indices,
                         gt_node_corr_overlaps, cfg, row_tile=128):
    n, c = ref_feats.shape
    m, _ = src_feats.shape

    # scatter of gt overlaps into the dense (N, M) matrix stays in JAX glue
    overlaps = jnp.zeros((n, m), jnp.float32).at[
        gt_node_corr_indices[:, 0], gt_node_corr_indices[:, 1]
    ].set(gt_node_corr_overlaps.astype(jnp.float32))

    tn = min(row_tile, _round_up(n, 8))
    n_pad = _round_up(n, tn)
    m_pad = _round_up(m, 128)
    c_pad = _round_up(c, 128)

    ref_p = _pad_to(ref_feats, (n_pad, c_pad))      # native dtype, no wrapper cast
    src_p = _pad_to(src_feats, (m_pad, c_pad))
    ovl_p = _pad_to(overlaps, (n_pad, m_pad))

    kernel = functools.partial(
        _coarse_circle_loss_kernel,
        n=n, m=m, tn=tn,
        pos_thresh=float(cfg.coarse_circle_loss_positive_threshold),
        pos_margin=float(cfg.coarse_circle_loss_positive_margin),
        neg_margin=float(cfg.coarse_circle_loss_negative_margin),
        pos_optimal=float(cfg.coarse_circle_loss_positive_optimal),
        neg_optimal=float(cfg.coarse_circle_loss_negative_optimal),
        log_scale=float(cfg.coarse_circle_loss_log_scale))

    out = pl.pallas_call(
        kernel,
        grid=(n_pad // tn,),
        in_specs=[
            pl.BlockSpec((tn, c_pad), lambda i: (i, 0)),
            pl.BlockSpec((m_pad, c_pad), lambda i: (0, 0)),   # resident across row tiles
            pl.BlockSpec((tn, m_pad), lambda i: (i, 0)),
        ],
        out_specs=pl.BlockSpec(memory_space=pltpu.MemorySpace.SMEM),
        out_shape=jax.ShapeDtypeStruct((1,), jnp.float32),
        scratch_shapes=[
            pltpu.VMEM((1, m_pad), jnp.float32),   # col running max (pos)
            pltpu.VMEM((1, m_pad), jnp.float32),   # col running sum (pos)
            pltpu.VMEM((1, m_pad), jnp.float32),   # col pos count
            pltpu.VMEM((1, m_pad), jnp.float32),   # col running max (neg)
            pltpu.VMEM((1, m_pad), jnp.float32),   # col running sum (neg)
            pltpu.VMEM((1, m_pad), jnp.float32),   # col neg count
            pltpu.SMEM((2,), jnp.float32),         # [row loss sum, row mask count]
        ],
        compiler_params=pltpu.CompilerParams(
            dimension_semantics=("arbitrary",),      # column accumulators -> sequential
            vmem_limit_bytes=48 * 1024 * 1024),
    )(ref_p, src_p, ovl_p)
    return out[0]


# ----------------------------------------------------------------------------- fine matching loss
def _fine_matching_loss_kernel(ref_ref, src_ref, rmask_ref, smask_ref,
                               core_ref, srow_ref, scol_ref, out_ref, acc_ref,
                               *, pos_radius_sq, num_transforms):
    i = pl.program_id(0)

    @pl.when(i == 0)
    def _init():
        acc_ref[0] = 0.0
        acc_ref[1] = 0.0

    rmask = rmask_ref[...].astype(jnp.float32)            # (TB, K)
    smask = smask_ref[...].astype(jnp.float32)
    gt_masks = rmask[:, :, None] * smask[:, None, :]      # (TB, K, K)

    gt_corr = jnp.zeros(gt_masks.shape, jnp.float32)
    for tr in range(num_transforms):                      # static unroll over transforms
        d2 = jnp.zeros(gt_masks.shape, jnp.float32)
        for c in range(3):                                # per-coordinate VPU distances
            rc = ref_ref[c].astype(jnp.float32)           # (TB, K)
            sc = src_ref[tr, c].astype(jnp.float32)       # (TB, K)
            diff = rc[:, :, None] - sc[:, None, :]
            d2 = d2 + diff * diff
        corr = jnp.where(d2 < pos_radius_sq, 1.0, 0.0) * gt_masks
        gt_corr = jnp.maximum(gt_corr, corr)              # logical OR over transforms

    slack_row = jnp.where(jnp.sum(gt_corr, axis=2) == 0.0, 1.0, 0.0) * rmask   # (TB, K)
    slack_col = jnp.where(jnp.sum(gt_corr, axis=1) == 0.0, 1.0, 0.0) * smask   # (TB, K)

    total = (jnp.sum(core_ref[...].astype(jnp.float32) * gt_corr)
             + jnp.sum(srow_ref[...].astype(jnp.float32) * slack_row)
             + jnp.sum(scol_ref[...].astype(jnp.float32) * slack_col))
    count = jnp.sum(gt_corr) + jnp.sum(slack_row) + jnp.sum(slack_col)

    acc_ref[0] = acc_ref[0] + total
    acc_ref[1] = acc_ref[1] + count

    @pl.when(i == pl.num_programs(0) - 1)
    def _finalize():
        out_ref[0] = -acc_ref[0] / jnp.maximum(acc_ref[1], 1.0)   # == -scores[labels].mean()


def fine_matching_loss(ref_knn_points, src_knn_points, ref_knn_masks, src_knn_masks,
                       matching_scores, transforms, cfg, batch_tile=64):
    b, k, _ = ref_knn_points.shape
    t = transforms.shape[0]

    # 4x4 rigid transform of the knn patches for every hypothesis (glue)
    rot = transforms[:, :3, :3]                    # (T, 3, 3)
    trans = transforms[:, :3, 3]                   # (T, 3)
    src_all = jnp.einsum('bkc,tdc->tbkd', src_knn_points, rot) + trans[:, None, None, :]

    # coordinate-major layout keeps K on lanes; distances are built on the VPU
    ref_cmaj = jnp.transpose(ref_knn_points, (2, 0, 1))            # (3, B, K)
    src_cmaj = jnp.transpose(src_all, (0, 3, 1, 2))                # (T, 3, B, K)

    # lane-aligned matching-score slabs (no in-kernel slicing of the (K+1,K+1) array)
    core = matching_scores[:, :k, :k]              # (B, K, K)
    slack_row = matching_scores[:, :k, k]          # (B, K)
    slack_col = matching_scores[:, k, :k]          # (B, K)

    rmask = ref_knn_masks.astype(jnp.int8)
    smask = src_knn_masks.astype(jnp.int8)

    if b <= batch_tile:
        tb, b_pad = b, b
    else:
        tb = batch_tile                            # multiple of 8
        b_pad = _round_up(b, tb)

    ref_cmaj = _pad_to(ref_cmaj, (3, b_pad, k))
    src_cmaj = _pad_to(src_cmaj, (t, 3, b_pad, k))
    rmask = _pad_to(rmask, (b_pad, k))
    smask = _pad_to(smask, (b_pad, k))
    core = _pad_to(core, (b_pad, k, k))
    slack_row = _pad_to(slack_row, (b_pad, k))
    slack_col = _pad_to(slack_col, (b_pad, k))

    kernel = functools.partial(
        _fine_matching_loss_kernel,
        pos_radius_sq=float(cfg.fine_sinkhorn_loss_positive_radius) ** 2,
        num_transforms=t)

    out = pl.pallas_call(
        kernel,
        grid=(b_pad // tb,),
        in_specs=[
            pl.BlockSpec((3, tb, k), lambda i: (0, i, 0)),
            pl.BlockSpec((t, 3, tb, k), lambda i: (0, 0, i, 0)),
            pl.BlockSpec((tb, k), lambda i: (i, 0)),
            pl.BlockSpec((tb, k), lambda i: (i, 0)),
            pl.BlockSpec((tb, k, k), lambda i: (i, 0, 0)),
            pl.BlockSpec((tb, k), lambda i: (i, 0)),
            pl.BlockSpec((tb, k), lambda i: (i, 0)),
        ],
        out_specs=pl.BlockSpec(memory_space=pltpu.MemorySpace.SMEM),
        out_shape=jax.ShapeDtypeStruct((1,), jnp.float32),
        scratch_shapes=[pltpu.SMEM((2,), jnp.float32)],    # [score sum, label count]
        compiler_params=pltpu.CompilerParams(
            dimension_semantics=("arbitrary",),
            vmem_limit_bytes=32 * 1024 * 1024),
    )(ref_cmaj, src_cmaj, rmask, smask, core, slack_row, slack_col)
    return out[0]


# ----------------------------------------------------------------------------- fused gather + BCE + dice
def _mask_bce_dice_kernel(idx_ref, pred_ref, gt_ref, out_ref, acc_ref, *, inv_bce, inv_dice):
    del idx_ref  # consumed by the index_maps (row gather), not by the body
    l = pl.program_id(0)
    r = pl.program_id(1)

    @pl.when((l == 0) & (r == 0))
    def _init():
        acc_ref[0] = 0.0
        acc_ref[1] = 0.0

    x = pred_ref[...].astype(jnp.float32)       # (1, P) gathered logit row
    y = gt_ref[...].astype(jnp.float32)         # (1, P) gathered target row

    e = jnp.exp(-jnp.abs(x))                    # single transcendental per element
    bce_sum = jnp.sum(jnp.maximum(x, 0.0) - x * y + jnp.log(1.0 + e))
    sig = jnp.where(x >= 0.0, 1.0, e) * pl.reciprocal(1.0 + e, approx=True)
    num = 2.0 * jnp.sum(sig * y)
    den = jnp.sum(sig) + jnp.sum(y)
    dice = 1.0 - (num + 1.0) / (den + 1.0)

    acc_ref[0] = acc_ref[0] + bce_sum * inv_bce
    acc_ref[1] = acc_ref[1] + dice * inv_dice

    @pl.when((l == pl.num_programs(0) - 1) & (r == pl.num_programs(1) - 1))
    def _finalize():
        out_ref[0] = acc_ref[0]
        out_ref[1] = acc_ref[1]


def _fused_mask_loss(pred_rows_2d, gt_rows_2d, idx, num_layers, rows_per_layer,
                     inv_bce, inv_dice):
    """pred_rows_2d: (num_layers*rows_per_layer, P), gt_rows_2d: (n_gt_rows, P)."""
    p = pred_rows_2d.shape[1]
    r = idx.shape[0]
    kernel = functools.partial(_mask_bce_dice_kernel, inv_bce=inv_bce, inv_dice=inv_dice)
    out = pl.pallas_call(
        kernel,
        grid_spec=pltpu.PrefetchScalarGridSpec(
            num_scalar_prefetch=1,
            grid=(num_layers, r),
            in_specs=[
                # row gather via element-offset index_map (scalar-prefetched indices)
                pl.BlockSpec((pl.Element(1), p),
                             lambda l, rr, idx_ref: (l * rows_per_layer + idx_ref[rr], 0)),
                pl.BlockSpec((pl.Element(1), p),
                             lambda l, rr, idx_ref: (idx_ref[rr], 0)),
            ],
            out_specs=pl.BlockSpec(memory_space=pltpu.MemorySpace.SMEM),
            scratch_shapes=[pltpu.SMEM((2,), jnp.float32)],
        ),
        out_shape=jax.ShapeDtypeStruct((2,), jnp.float32),
        compiler_params=pltpu.CompilerParams(
            dimension_semantics=("arbitrary", "arbitrary"),
            vmem_limit_bytes=16 * 1024 * 1024),
    )(idx, pred_rows_2d, gt_rows_2d)
    return out[0], out[1]


def instance_mask_loss(pred_masks_list, gt_masks, gt_ref_node_corr_indices):
    num_layers = len(pred_masks_list)
    pred_stack = jnp.stack(pred_masks_list, axis=0)          # (L, N, P)
    _, n_rows, p = pred_stack.shape
    pred_2d = pred_stack.reshape(num_layers * n_rows, p)
    gt_i8 = gt_masks.astype(jnp.int8)                        # no f32 copy in HBM
    idx = gt_ref_node_corr_indices.astype(jnp.int32)
    r = idx.shape[0]
    # sums over (layer, gathered row) divided so outputs equal mean-over-layers of the
    # per-layer mean BCE / mean dice (identical to the reference loop + /len(list)).
    return _fused_mask_loss(pred_2d, gt_i8, idx, num_layers, n_rows,
                            inv_bce=1.0 / float(num_layers * r * p),
                            inv_dice=1.0 / float(num_layers * r))


def overlap_mask_loss(pred_instance_score, gt_instance_label):
    logits = jnp.squeeze(pred_instance_score, axis=1)[None, :]     # (1, N)
    targets = gt_instance_label.astype(jnp.int8)[None, :]          # (1, N)
    n = logits.shape[1]
    idx = jnp.zeros((1,), jnp.int32)
    return _fused_mask_loss(logits, targets, idx, num_layers=1, rows_per_layer=1,
                            inv_bce=1.0 / float(n), inv_dice=1.0)


# ----------------------------------------------------------------------------- MatchFullLoss
class Config:
    coarse_circle_loss_positive_margin = 0.1
    coarse_circle_loss_negative_margin = 1.4
    coarse_circle_loss_positive_optimal = 0.1
    coarse_circle_loss_negative_optimal = 1.4
    coarse_circle_loss_log_scale = 24.0
    coarse_circle_loss_positive_threshold = 0.1
    coarse_matching_num_proposal = 128          # unused in forward
    fine_sinkhorn_loss_positive_radius = 0.05
    weight_coarse_loss = 1.0
    weight_fine_loss = 1.0
    weight_instance_mask_loss = 1.0
    weight_overlap_mask_loss = 1.0


def match_full_loss(output_dict, data_dict, cfg):
    coarse_loss = coarse_matching_loss(
        output_dict['ref_feats_c'], output_dict['src_feats_c'],
        output_dict['gt_node_corr_indices'], output_dict['gt_node_corr_overlaps'], cfg)
    fine_loss = fine_matching_loss(
        output_dict['ref_node_corr_knn_points'], output_dict['src_node_corr_knn_points'],
        output_dict['ref_node_corr_knn_masks'], output_dict['src_node_corr_knn_masks'],
        output_dict['matching_scores'], data_dict['transform'], cfg)
    gt_ref_idx = output_dict['gt_node_corr_indices'][:, 0]
    mask_bce_loss, mask_dice_loss = instance_mask_loss(
        output_dict['pred_masks_list'], output_dict['gt_masks'], gt_ref_idx)
    object_bce_loss, object_dice_loss = overlap_mask_loss(
        output_dict['pred_instance_score'], output_dict['gt_instance_label'])

    loss = (cfg.weight_coarse_loss * coarse_loss
            + cfg.weight_fine_loss * fine_loss
            + cfg.weight_instance_mask_loss * (mask_bce_loss + mask_dice_loss)
            + cfg.weight_overlap_mask_loss * (object_bce_loss + object_dice_loss))
    return {'c_loss': coarse_loss, 'f_loss': fine_loss,
            'mask_bce_loss': mask_bce_loss, 'mask_dice_loss': mask_dice_loss,
            'object_bce_loss': object_bce_loss, 'object_dice_loss': object_dice_loss,
            'loss': loss}


# ----------------------------------------------------------------------------- demo / smoke test
if __name__ == "__main__":
    cfg = Config()
    key = jax.random.PRNGKey(0)
    keys = jax.random.split(key, 16)

    N_REF, N_SRC, FEAT_DIM = 32, 32, 64
    B, K = 4, 8
    P = 128
    NUM_CORR = 16
    NUM_DEC_LAYERS = 2

    # coarse features (L2 normalized, as pairwise_distance(normalized=True) assumes)
    ref_feats = jax.random.normal(keys[0], (N_REF, FEAT_DIM), jnp.float32)
    ref_feats = ref_feats / jnp.linalg.norm(ref_feats, axis=-1, keepdims=True)
    src_feats = jax.random.normal(keys[1], (N_SRC, FEAT_DIM), jnp.float32)
    src_feats = src_feats / jnp.linalg.norm(src_feats, axis=-1, keepdims=True)

    ref_idx = jax.random.permutation(keys[2], N_REF)[:NUM_CORR]
    src_idx = jax.random.permutation(keys[3], N_SRC)[:NUM_CORR]
    gt_node_corr_indices = jnp.stack([ref_idx, src_idx], axis=1).astype(jnp.int32)
    gt_node_corr_overlaps = jax.random.uniform(keys[4], (NUM_CORR,), jnp.float32,
                                               minval=0.3, maxval=1.0)

    # fine matching inputs
    ref_knn_points = jax.random.uniform(keys[5], (B, K, 3), jnp.float32)
    src_knn_points = jax.random.uniform(keys[6], (B, K, 3), jnp.float32)
    ref_knn_masks = jax.random.uniform(keys[7], (B, K)) < 0.85
    src_knn_masks = jax.random.uniform(keys[8], (B, K)) < 0.85
    matching_scores = jax.random.normal(keys[9], (B, K + 1, K + 1), jnp.float32)

    def make_transform(angle, tvec):
        c, s = jnp.cos(angle), jnp.sin(angle)
        rot = jnp.array([[c, -s, 0.0], [s, c, 0.0], [0.0, 0.0, 1.0]], jnp.float32)
        tf = jnp.eye(4, dtype=jnp.float32)
        return tf.at[:3, :3].set(rot).at[:3, 3].set(tvec)

    transforms = jnp.stack([
        make_transform(jnp.float32(0.1), jnp.array([0.05, -0.02, 0.01], jnp.float32)),
        make_transform(jnp.float32(-0.2), jnp.array([-0.03, 0.04, 0.02], jnp.float32)),
    ], axis=0)

    # instance / overlap mask inputs (synthetic "prediction" logits)
    pred_masks_list = [jax.random.normal(keys[10 + i], (N_REF, P), jnp.float32)
                       for i in range(NUM_DEC_LAYERS)]
    gt_masks = jax.random.uniform(keys[12], (N_REF, P)) > 0.5
    pred_instance_score = jax.random.normal(keys[13], (N_REF, 1), jnp.float32)
    gt_instance_label = jax.random.uniform(keys[14], (N_REF,)) > 0.5

    output_dict = {
        'ref_feats_c': ref_feats,
        'src_feats_c': src_feats,
        'gt_node_corr_indices': gt_node_corr_indices,
        'gt_node_corr_overlaps': gt_node_corr_overlaps,
        'ref_node_corr_knn_points': ref_knn_points,
        'src_node_corr_knn_points': src_knn_points,
        'ref_node_corr_knn_masks': ref_knn_masks,
        'src_node_corr_knn_masks': src_knn_masks,
        'matching_scores': matching_scores,
        'pred_masks_list': pred_masks_list,
        'gt_masks': gt_masks,
        'ref_node_corr_indices': ref_idx,          # present but unused (as in torch code)
        'pred_instance_score': pred_instance_score,
        'gt_instance_label': gt_instance_label,
    }
    data_dict = {'transform': transforms}

    result = match_full_loss(output_dict, data_dict, cfg)
    result = jax.block_until_ready(result)
    print("KERNEL_OK")
</pallas_src>

<mosaic_0001>
module attributes {stable_mosaic.version = 11 : i64} {
  func.func @_coarse_circle_loss_kernel(%arg0: i32, %arg1: memref<32x128xf32, #tpu.memory_space<vmem>>, %arg2: memref<128x128xf32, #tpu.memory_space<vmem>>, %arg3: memref<32x128xf32, #tpu.memory_space<vmem>>, %arg4: memref<1xf32, #tpu.memory_space<smem>>, %arg5: memref<1x128xf32, #tpu.memory_space<vmem>>, %arg6: memref<1x128xf32, #tpu.memory_space<vmem>>, %arg7: memref<1x128xf32, #tpu.memory_space<vmem>>, %arg8: memref<1x128xf32, #tpu.memory_space<vmem>>, %arg9: memref<1x128xf32, #tpu.memory_space<vmem>>, %arg10: memref<1x128xf32, #tpu.memory_space<vmem>>, %arg11: memref<2xf32, #tpu.memory_space<smem>>) attributes {dimension_semantics = [#tpu.dimension_semantics<arbitrary>], iteration_bounds = array<i64: 1>, scalar_prefetch = 0 : i64, scratch_operands = 7 : i64, tpu.core_type = #tpu.core_type<tc>, window_params = [{transform_indices = @transform_0, window_bounds = array<i64: 32, 128>}, {pipeline_mode = #tpu.pipeline_mode<synchronous>, transform_indices = @transform_1, window_bounds = array<i64: 128, 128>}, {transform_indices = @transform_2, window_bounds = array<i64: 32, 128>}, {transform_indices = @transform_3, window_bounds = array<i64: 1>}]} {
    %c0_i32 = arith.constant 0 : i32
    %0 = arith.cmpi eq, %arg0, %c0_i32 : i32
    %1 = arith.extui %0 : i1 to i32
    %c0_i32_0 = arith.constant 0 : i32
    %2 = arith.cmpi ne, %1, %c0_i32_0 : i32
    scf.if %2 {
      %cst_82 = arith.constant -1.000000e+30 : f32
      %178 = vector.broadcast %cst_82 : f32 to vector<1x128xf32>
      %c0_83 = arith.constant 0 : index
      %c0_84 = arith.constant 0 : index
      %179 = vector.load %arg5[%c0_83, %c0_84] : memref<1x128xf32, #tpu.memory_space<vmem>>, vector<1x128xf32>
      tpu.vector_store %arg5[%c0_83, %c0_84], %178 {strides = array<i32>} : memref<1x128xf32, #tpu.memory_space<vmem>>, vector<1x128xf32>,
      %cst_85 = arith.constant -1.000000e+30 : f32
      %180 = vector.broadcast %cst_85 : f32 to vector<1x128xf32>
      %c0_86 = arith.constant 0 : index
      %c0_87 = arith.constant 0 : index
      %181 = vector.load %arg8[%c0_86, %c0_87] : memref<1x128xf32, #tpu.memory_space<vmem>>, vector<1x128xf32>
      tpu.vector_store %arg8[%c0_86, %c0_87], %180 {strides = array<i32>} : memref<1x128xf32, #tpu.memory_space<vmem>>, vector<1x128xf32>,
      %cst_88 = arith.constant 0.000000e+00 : f32
      %182 = vector.broadcast %cst_88 : f32 to vector<1x128xf32>
      %c0_89 = arith.constant 0 : index
      %c0_90 = arith.constant 0 : index
      %183 = vector.load %arg6[%c0_89, %c0_90] : memref<1x128xf32, #tpu.memory_space<vmem>>, vector<1x128xf32>
      tpu.vector_store %arg6[%c0_89, %c0_90], %182 {strides = array<i32>} : memref<1x128xf32, #tpu.memory_space<vmem>>, vector<1x128xf32>,
      %cst_91 = arith.constant 0.000000e+00 : f32
      %184 = vector.broadcast %cst_91 : f32 to vector<1x128xf32>
      %c0_92 = arith.constant 0 : index
      %c0_93 = arith.constant 0 : index
      %185 = vector.load %arg9[%c0_92, %c0_93] : memref<1x128xf32, #tpu.memory_space<vmem>>, vector<1x128xf32>
      tpu.vector_store %arg9[%c0_92, %c0_93], %184 {strides = array<i32>} : memref<1x128xf32, #tpu.memory_space<vmem>>, vector<1x128xf32>,
      %cst_94 = arith.constant 0.000000e+00 : f32
      %186 = vector.broadcast %cst_94 : f32 to vector<1x128xf32>
      %c0_95 = arith.constant 0 : index
      %c0_96 = arith.constant 0 : index
      %187 = vector.load %arg7[%c0_95, %c0_96] : memref<1x128xf32, #tpu.memory_space<vmem>>, vector<1x128xf32>
      tpu.vector_store %arg7[%c0_95, %c0_96], %186 {strides = array<i32>} : memref<1x128xf32, #tpu.memory_space<vmem>>, vector<1x128xf32>,
      %cst_97 = arith.constant 0.000000e+00 : f32
      %188 = vector.broadcast %cst_97 : f32 to vector<1x128xf32>
      %c0_98 = arith.constant 0 : index
      %c0_99 = arith.constant 0 : index
      %189 = vector.load %arg10[%c0_98, %c0_99] : memref<1x128xf32, #tpu.memory_space<vmem>>, vector<1x128xf32>
      tpu.vector_store %arg10[%c0_98, %c0_99], %188 {strides = array<i32>} : memref<1x128xf32, #tpu.memory_space<vmem>>, vector<1x128xf32>,
      %cst_100 = arith.constant 0.000000e+00 : f32
      %c0_101 = arith.constant 0 : index
      %190 = memref.load %arg11[%c0_101] : memref<2xf32, #tpu.memory_space<smem>>
      memref.store %cst_100, %arg11[%c0_101] : memref<2xf32, #tpu.memory_space<smem>>
      %cst_102 = arith.constant 0.000000e+00 : f32
      %c1_103 = arith.constant 1 : index
      %191 = memref.load %arg11[%c1_103] : memref<2xf32, #tpu.memory_space<smem>>
      memref.store %cst_102, %arg11[%c1_103] : memref<2xf32, #tpu.memory_space<smem>>
    } else {
    }
    %c0 = arith.constant 0 : index
    %c0_1 = arith.constant 0 : index
    %3 = vector.load %arg1[%c0, %c0_1] : memref<32x128xf32, #tpu.memory_space<vmem>>, vector<32x128xf32>
    %c0_2 = arith.constant 0 : index
    %c0_3 = arith.constant 0 : index
    %4 = vector.load %arg2[%c0_2, %c0_3] : memref<128x128xf32, #tpu.memory_space<vmem>>, vector<128x128xf32>
    %c0_4 = arith.constant 0 : index
    %c0_5 = arith.constant 0 : index
    %5 = vector.load %arg3[%c0_4, %c0_5] : memref<32x128xf32, #tpu.memory_space<vmem>>, vector<32x128xf32>
    %cst = arith.constant dense<0.000000e+00> : vector<32x128xf32>
    %6 = tpu.matmul %3, %4, %cst {dimension_numbers = #tpu.dot_dimension_numbers<[1], [1], [0], [0], [0, 0, 1, 0], [], []>} : vector<32x128xf32>, vector<128x128xf32>, vector<32x128xf32> -> vector<32x128xf32>
    %cst_6 = arith.constant 2.000000e+00 : f32
    %7 = vector.broadcast %cst_6 : f32 to vector<32x128xf32>
    %8 = arith.mulf %7, %6 : vector<32x128xf32>
    %cst_7 = arith.constant 2.000000e+00 : f32
    %9 = vector.broadcast %cst_7 : f32 to vector<32x128xf32>
    %10 = arith.subf %9, %8 : vector<32x128xf32>
    %cst_8 = arith.constant 0.000000e+00 : f32
    %11 = vector.broadcast %cst_8 : f32 to vector<32x128xf32>
    %12 = arith.maximumf %10, %11 : vector<32x128xf32>
    %13 = math.sqrt %12 : vector<32x128xf32>
    %c32_i32 = arith.constant 32 : i32
    %14 = arith.muli %arg0, %c32_i32 : i32
    %15 = tpu.iota {dimensions = array<i32: 0>} : vector<32x1xi32>
    %16 = vector.broadcast %14 : i32 to vector<32x1xi32>
    %17 = arith.addi %16, %15 : vector<32x1xi32>
    %18 = tpu.iota {dimensions = array<i32: 1>} : vector<1x128xi32>
    %c32_i32_9 = arith.constant 32 : i32
    %19 = vector.broadcast %c32_i32_9 : i32 to vector<32x1xi32>
    %20 = arith.cmpi slt, %17, %19 : vector<32x1xi32>
    %c32_i32_10 = arith.constant 32 : i32
    %21 = vector.broadcast %c32_i32_10 : i32 to vector<1x128xi32>
    %22 = arith.cmpi slt, %18, %21 : vector<1x128xi32>
    %23 = vector.broadcast %20 : vector<32x1xi1> to vector<32x128xi1>
    %24 = vector.broadcast %22 : vector<1x128xi1> to vector<32x128xi1>
    %25 = arith.andi %23, %24 : vector<32x128xi1>
    %26 = arith.extui %25 : vector<32x128xi1> to vector<32x128xi32>
    %27 = arith.sitofp %26 : vector<32x128xi32> to vector<32x128xf32>
    %cst_11 = arith.constant 1.000000e-01 : f32
    %28 = vector.broadcast %cst_11 : f32 to vector<32x128xf32>
    %29 = arith.cmpf ogt, %5, %28 : vector<32x128xf32>
    %cst_12 = arith.constant 1.000000e+00 : f32
    %cst_13 = arith.constant 0.000000e+00 : f32
    %30 = vector.broadcast %cst_12 : f32 to vector<32x128xf32>
    %31 = vector.broadcast %cst_13 : f32 to vector<32x128xf32>
    %32 = arith.select %29, %30, %31 : vector<32x128xi1>, vector<32x128xf32>
    %33 = arith.mulf %32, %27 : vector<32x128xf32>
    %cst_14 = arith.constant 0.000000e+00 : f32
    %34 = vector.broadcast %cst_14 : f32 to vector<32x128xf32>
    %35 = arith.cmpf oeq, %5, %34 : vector<32x128xf32>
    %cst_15 = arith.constant 1.000000e+00 : f32
    %cst_16 = arith.constant 0.000000e+00 : f32
    %36 = vector.broadcast %cst_15 : f32 to vector<32x128xf32>
    %37 = vector.broadcast %cst_16 : f32 to vector<32x128xf32>
    %38 = arith.select %35, %36, %37 : vector<32x128xi1>, vector<32x128xf32>
    %39 = arith.mulf %38, %27 : vector<32x128xf32>
    %cst_17 = arith.constant 1.000000e+00 : f32
    %40 = vector.broadcast %cst_17 : f32 to vector<32x128xf32>
    %41 = arith.subf %40, %33 : vector<32x128xf32>
    %cst_18 = arith.constant 1.000000e+05 : f32
    %42 = vector.broadcast %cst_18 : f32 to vector<32x128xf32>
    %43 = arith.mulf %42, %41 : vector<32x128xf32>
    %44 = arith.subf %13, %43 : vector<32x128xf32>
    %cst_19 = arith.constant 1.000000e-01 : f32
    %45 = vector.broadcast %cst_19 : f32 to vector<32x128xf32>
    %46 = arith.subf %44, %45 : vector<32x128xf32>
    %cst_20 = arith.constant 0.000000e+00 : f32
    %47 = vector.broadcast %cst_20 : f32 to vector<32x128xf32>
    %48 = arith.maximumf %46, %47 : vector<32x128xf32>
    %49 = arith.mulf %5, %33 : vector<32x128xf32>
    %50 = math.sqrt %49 : vector<32x128xf32>
    %51 = arith.mulf %48, %50 : vector<32x128xf32>
    %cst_21 = arith.constant 1.000000e+00 : f32
    %52 = vector.broadcast %cst_21 : f32 to vector<32x128xf32>
    %53 = arith.subf %52, %39 : vector<32x128xf32>
    %cst_22 = arith.constant 1.000000e+05 : f32
    %54 = vector.broadcast %cst_22 : f32 to vector<32x128xf32>
    %55 = arith.mulf %54, %53 : vector<32x128xf32>
    %56 = arith.addf %13, %55 : vector<32x128xf32>
    %cst_23 = arith.constant 1.400000e+00 : f32
    %57 = vector.broadcast %cst_23 : f32 to vector<32x128xf32>
    %58 = arith.subf %57, %56 : vector<32x128xf32>
    %cst_24 = arith.constant 0.000000e+00 : f32
    %59 = vector.broadcast %cst_24 : f32 to vector<32x128xf32>
    %60 = arith.maximumf %58, %59 : vector<32x128xf32>
    %cst_25 = arith.constant 1.000000e-01 : f32
    %61 = vector.broadcast %cst_25 : f32 to vector<32x128xf32>
    %62 = arith.subf %13, %61 : vector<32x128xf32>
    %cst_26 = arith.constant 2.400000e+01 : f32
    %63 = vector.broadcast %cst_26 : f32 to vector<32x128xf32>
    %64 = arith.mulf %63, %62 : vector<32x128xf32>
    %65 = arith.mulf %64, %51 : vector<32x128xf32>
    %cst_27 = arith.constant -1.000000e+30 : f32
    %66 = vector.broadcast %cst_27 : f32 to vector<32x128xf32>
    %67 = arith.select %25, %65, %66 : vector<32x128xi1>, vector<32x128xf32>
    %cst_28 = arith.constant 1.400000e+00 : f32
    %68 = vector.broadcast %cst_28 : f32 to vector<32x128xf32>
    %69 = arith.subf %68, %13 : vector<32x128xf32>
    %cst_29 = arith.constant 2.400000e+01 : f32
    %70 = vector.broadcast %cst_29 : f32 to vector<32x128xf32>
    %71 = arith.mulf %70, %69 : vector<32x128xf32>
    %72 = arith.mulf %71, %60 : vector<32x128xf32>
    %cst_30 = arith.constant -1.000000e+30 : f32
    %73 = vector.broadcast %cst_30 : f32 to vector<32x128xf32>
    %74 = arith.select %25, %72, %73 : vector<32x128xi1>, vector<32x128xf32>
    %cst_31 = arith.constant dense<0.000000e+00> : vector<32xf32>
    %75 = vector.multi_reduction <add>, %33, %cst_31 [1] : vector<32x128xf32> to vector<32xf32>
    %76 = vector.shape_cast %75 : vector<32xf32> to vector<32x1xf32>
    %cst_32 = arith.constant 0.000000e+00 : f32
    %77 = vector.broadcast %cst_32 : f32 to vector<32x1xf32>
    %78 = arith.cmpf ogt, %76, %77 : vector<32x1xf32>
    %cst_33 = arith.constant dense<0.000000e+00> : vector<32xf32>
    %79 = vector.multi_reduction <add>, %39, %cst_33 [1] : vector<32x128xf32> to vector<32xf32>
    %80 = vector.shape_cast %79 : vector<32xf32> to vector<32x1xf32>
    %cst_34 = arith.constant 0.000000e+00 : f32
    %81 = vector.broadcast %cst_34 : f32 to vector<32x1xf32>
    %82 = arith.cmpf ogt, %80, %81 : vector<32x1xf32>
    %83 = arith.andi %78, %82 : vector<32x1xi1>
    %cst_35 = arith.constant 1.000000e+00 : f32
    %cst_36 = arith.constant 0.000000e+00 : f32
    %84 = vector.broadcast %cst_35 : f32 to vector<32x1xf32>
    %85 = vector.broadcast %cst_36 : f32 to vector<32x1xf32>
    %86 = arith.select %83, %84, %85 : vector<32x1xi1>, vector<32x1xf32>
    %cst_37 = arith.constant dense<0xFF800000> : vector<32xf32>
    %87 = vector.multi_reduction <maximumf>, %67, %cst_37 [1] : vector<32x128xf32> to vector<32xf32>
    %88 = vector.shape_cast %87 : vector<32xf32> to vector<32x1xf32>
    %89 = vector.broadcast %88 : vector<32x1xf32> to vector<32x128xf32>
    %90 = arith.subf %67, %89 : vector<32x128xf32>
    %91 = math.exp %90 : vector<32x128xf32>
    %cst_38 = arith.constant dense<0.000000e+00> : vector<32xf32>
    %92 = vector.multi_reduction <add>, %91, %cst_38 [1] : vector<32x128xf32> to vector<32xf32>
    %93 = vector.shape_cast %92 : vector<32xf32> to vector<32x1xf32>
    %94 = math.log %93 : vector<32x1xf32>
    %95 = arith.addf %94, %88 : vector<32x1xf32>
    %cst_39 = arith.constant dense<0xFF800000> : vector<32xf32>
    %96 = vector.multi_reduction <maximumf>, %74, %cst_39 [1] : vector<32x128xf32> to vector<32xf32>
    %97 = vector.shape_cast %96 : vector<32xf32> to vector<32x1xf32>
    %98 = vector.broadcast %97 : vector<32x1xf32> to vector<32x128xf32>
    %99 = arith.subf %74, %98 : vector<32x128xf32>
    %100 = math.exp %99 : vector<32x128xf32>
    %cst_40 = arith.constant dense<0.000000e+00> : vector<32xf32>
    %101 = vector.multi_reduction <add>, %100, %cst_40 [1] : vector<32x128xf32> to vector<32xf32>
    %102 = vector.shape_cast %101 : vector<32xf32> to vector<32x1xf32>
    %103 = math.log %102 : vector<32x1xf32>
    %104 = arith.addf %103, %97 : vector<32x1xf32>
    %105 = arith.addf %95, %104 : vector<32x1xf32>
    %cst_41 = arith.constant 0.000000e+00 : f32
    %106 = vector.broadcast %cst_41 : f32 to vector<32x1xf32>
    %107 = arith.maximumf %105, %106 : vector<32x1xf32>
    %108 = math.absf %105 : vector<32x1xf32>
    %cst_42 = arith.constant 0.000000e+00 : f32
    %109 = vector.broadcast %cst_42 : f32 to vector<32x1xf32>
    %110 = arith.subf %109, %108 : vector<32x1xf32>
    %111 = math.exp %110 : vector<32x1xf32>
    %cst_43 = arith.constant 1.000000e+00 : f32
    %112 = vector.broadcast %cst_43 : f32 to vector<32x1xf32>
    %113 = arith.addf %112, %111 : vector<32x1xf32>
    %114 = math.log %113 : vector<32x1xf32>
    %115 = arith.addf %107, %114 : vector<32x1xf32>
    %cst_44 = arith.constant 2.400000e+01 : f32
    %116 = vector.broadcast %cst_44 : f32 to vector<32x1xf32>
    %117 = arith.divf %115, %116 : vector<32x1xf32>
    %c0_45 = arith.constant 0 : index
    %118 = memref.load %arg11[%c0_45] : memref<2xf32, #tpu.memory_space<smem>>
    %119 = arith.mulf %117, %86 : vector<32x1xf32>
    %120 = vector.shape_cast %119 : vector<32x1xf32> to vector<1x32x1xf32>
    %cst_46 = arith.constant dense<0.000000e+00> : vector<1xf32>
    %121 = vector.multi_reduction <add>, %120, %cst_46 [1, 2] : vector<1x32x1xf32> to vector<1xf32>
    %122 = vector.shape_cast %121 : vector<1xf32> to vector<1x1x1xf32>
    %123 = vector.extract %122[0, 0, 0] : f32 from vector<1x1x1xf32>
    %124 = arith.addf %118, %123 : f32
    %c0_47 = arith.constant 0 : index
    %125 = memref.load %arg11[%c0_47] : memref<2xf32, #tpu.memory_space<smem>>
    memref.store %124, %arg11[%c0_47] : memref<2xf32, #tpu.memory_space<smem>>
    %c1 = arith.constant 1 : index
    %126 = memref.load %arg11[%c1] : memref<2xf32, #tpu.memory_space<smem>>
    %127 = vector.shape_cast %86 : vector<32x1xf32> to vector<1x32x1xf32>
    %cst_48 = arith.constant dense<0.000000e+00> : vector<1xf32>
    %128 = vector.multi_reduction <add>, %127, %cst_48 [1, 2] : vector<1x32x1xf32> to vector<1xf32>
    %129 = vector.shape_cast %128 : vector<1xf32> to vector<1x1x1xf32>
    %130 = vector.extract %129[0, 0, 0] : f32 from vector<1x1x1xf32>
    %131 = arith.addf %126, %130 : f32
    %c1_49 = arith.constant 1 : index
    %132 = memref.load %arg11[%c1_49] : memref<2xf32, #tpu.memory_space<smem>>
    memref.store %131, %arg11[%c1_49] : memref<2xf32, #tpu.memory_space<smem>>
    %cst_50 = arith.constant dense<0xFF800000> : vector<128xf32>
    %133 = vector.multi_reduction <maximumf>, %67, %cst_50 [0] : vector<32x128xf32> to vector<128xf32>
    %134 = vector.shape_cast %133 : vector<128xf32> to vector<1x128xf32>
    %c0_51 = arith.constant 0 : index
    %c0_52 = arith.constant 0 : index
    %135 = vector.load %arg5[%c0_51, %c0_52] : memref<1x128xf32, #tpu.memory_space<vmem>>, vector<1x128xf32>
    %136 = arith.maximumf %135, %134 : vector<1x128xf32>
    %c0_53 = arith.constant 0 : index
    %c0_54 = arith.constant 0 : index
    %137 = vector.load %arg6[%c0_53, %c0_54] : memref<1x128xf32, #tpu.memory_space<vmem>>, vector<1x128xf32>
    %138 = arith.subf %135, %136 : vector<1x128xf32>
    %139 = math.exp %138 : vector<1x128xf32>
    %140 = arith.mulf %137, %139 : vector<1x128xf32>
    %141 = vector.broadcast %136 : vector<1x128xf32> to vector<32x128xf32>
    %142 = arith.subf %67, %141 : vector<32x128xf32>
    %143 = math.exp %142 : vector<32x128xf32>
    %cst_55 = arith.constant dense<0.000000e+00> : vector<128xf32>
    %144 = vector.multi_reduction <add>, %143, %cst_55 [0] : vector<32x128xf32> to vector<128xf32>
    %145 = vector.shape_cast %144 : vector<128xf32> to vector<1x128xf32>
    %146 = arith.addf %140, %145 : vector<1x128xf32>
    %c0_56 = arith.constant 0 : index
    %c0_57 = arith.constant 0 : index
    %147 = vector.load %arg6[%c0_56, %c0_57] : memref<1x128xf32, #tpu.memory_space<vmem>>, vector<1x128xf32>
    tpu.vector_store %arg6[%c0_56, %c0_57], %146 {strides = array<i32>} : memref<1x128xf32, #tpu.memory_space<vmem>>, vector<1x128xf32>,
    %c0_58 = arith.constant 0 : index
    %c0_59 = arith.constant 0 : index
    %148 = vector.load %arg5[%c0_58, %c0_59] : memref<1x128xf32, #tpu.memory_space<vmem>>, vector<1x128xf32>
    tpu.vector_store %arg5[%c0_58, %c0_59], %136 {strides = array<i32>} : memref<1x128xf32, #tpu.memory_space<vmem>>, vector<1x128xf32>,
    %c0_60 = arith.constant 0 : index
    %c0_61 = arith.constant 0 : index
    %149 = vector.load %arg7[%c0_60, %c0_61] : memref<1x128xf32, #tpu.memory_space<vmem>>, vector<1x128xf32>
    %cst_62 = arith.constant dense<0.000000e+00> : vector<128xf32>
    %150 = vector.multi_reduction <add>, %33, %cst_62 [0] : vector<32x128xf32> to vector<128xf32>
    %151 = vector.shape_cast %150 : vector<128xf32> to vector<1x128xf32>
    %152 = arith.addf %149, %151 : vector<1x128xf32>
    %c0_63 = arith.constant 0 : index
    %c0_64 = arith.constant 0 : index
    %153 = vector.load %arg7[%c0_63, %c0_64] : memref<1x128xf32, #tpu.memory_space<vmem>>, vector<1x128xf32>
    tpu.vector_store %arg7[%c0_63, %c0_64], %152 {strides = array<i32>} : memref<1x128xf32, #tpu.memory_space<vmem>>, vector<1x128xf32>,
    %cst_65 = arith.constant dense<0xFF800000> : vector<128xf32>
    %154 = vector.multi_reduction <maximumf>, %74, %cst_65 [0] : vector<32x128xf32> to vector<128xf32>
    %155 = vector.shape_cast %154 : vector<128xf32> to vector<1x128xf32>
    %c0_66 = arith.constant 0 : index
    %c0_67 = arith.constant 0 : index
    %156 = vector.load %arg8[%c0_66, %c0_67] : memref<1x128xf32, #tpu.memory_space<vmem>>, vector<1x128xf32>
    %157 = arith.maximumf %156, %155 : vector<1x128xf32>
    %c0_68 = arith.constant 0 : index
    %c0_69 = arith.constant 0 : index
    %158 = vector.load %arg9[%c0_68, %c0_69] : memref<1x128xf32, #tpu.memory_space<vmem>>, vector<1x128xf32>
    %159 = arith.subf %156, %157 : vector<1x128xf32>
    %160 = math.exp %159 : vector<1x128xf32>
    %161 = arith.mulf %158, %160 : vector<1x128xf32>
    %162 = vector.broadcast %157 : vector<1x128xf32> to vector<32x128xf32>
    %163 = arith.subf %74, %162 : vector<32x128xf32>
    %164 = math.exp %163 : vector<32x128xf32>
    %cst_70 = arith.constant dense<0.000000e+00> : vector<128xf32>
    %165 = vector.multi_reduction <add>, %164, %cst_70 [0] : vector<32x128xf32> to vector<128xf32>
    %166 = vector.shape_cast %165 : vector<128xf32> to vector<1x128xf32>
    %167 = arith.addf %161, %166 : vector<1x128xf32>
    %c0_71 = arith.constant 0 : index
    %c0_72 = arith.constant 0 : index
    %168 = vector.load %arg9[%c0_71, %c0_72] : memref<1x128xf32, #tpu.memory_space<vmem>>, vector<1x128xf32>
    tpu.vector_store %arg9[%c0_71, %c0_72], %167 {strides = array<i32>} : memref<1x128xf32, #tpu.memory_space<vmem>>, vector<1x128xf32>,
    %c0_73 = arith.constant 0 : index
    %c0_74 = arith.constant 0 : index
    %169 = vector.load %arg8[%c0_73, %c0_74] : memref<1x128xf32, #tpu.memory_space<vmem>>, vector<1x128xf32>
    tpu.vector_store %arg8[%c0_73, %c0_74], %157 {strides = array<i32>} : memref<1x128xf32, #tpu.memory_space<vmem>>, vector<1x128xf32>,
    %c0_75 = arith.constant 0 : index
    %c0_76 = arith.constant 0 : index
    %170 = vector.load %arg10[%c0_75, %c0_76] : memref<1x128xf32, #tpu.memory_space<vmem>>, vector<1x128xf32>
    %cst_77 = arith.constant dense<0.000000e+00> : vector<128xf32>
    %171 = vector.multi_reduction <add>, %39, %cst_77 [0] : vector<32x128xf32> to vector<128xf32>
    %172 = vector.shape_cast %171 : vector<128xf32> to vector<1x128xf32>
    %173 = arith.addf %170, %172 : vector<1x128xf32>
    %c0_78 = arith.constant 0 : index
    %c0_79 = arith.constant 0 : index
    %174 = vector.load %arg10[%c0_78, %c0_79] : memref<1x128xf32, #tpu.memory_space<vmem>>, vector<1x128xf32>
    tpu.vector_store %arg10[%c0_78, %c0_79], %173 {strides = array<i32>} : memref<1x128xf32, #tpu.memory_space<vmem>>, vector<1x128xf32>,
    %c0_i32_80 = arith.constant 0 : i32
    %175 = arith.cmpi eq, %arg0, %c0_i32_80 : i32
    %176 = arith.extui %175 : i1 to i32
    %c0_i32_81 = arith.constant 0 : i32
    %177 = arith.cmpi ne, %176, %c0_i32_81 : i32
    scf.if %177 {
      %c0_82 = arith.constant 0 : index
      %c0_83 = arith.constant 0 : index
      %178 = vector.load %arg6[%c0_82, %c0_83] : memref<1x128xf32, #tpu.memory_space<vmem>>, vector<1x128xf32>
      %179 = math.log %178 : vector<1x128xf32>
      %c0_84 = arith.constant 0 : index
      %c0_85 = arith.constant 0 : index
      %180 = vector.load %arg5[%c0_84, %c0_85] : memref<1x128xf32, #tpu.memory_space<vmem>>, vector<1x128xf32>
      %181 = arith.addf %179, %180 : vector<1x128xf32>
      %c0_86 = arith.constant 0 : index
      %c0_87 = arith.constant 0 : index
      %182 = vector.load %arg9[%c0_86, %c0_87] : memref<1x128xf32, #tpu.memory_space<vmem>>, vector<1x128xf32>
      %183 = math.log %182 : vector<1x128xf32>
      %c0_88 = arith.constant 0 : index
      %c0_89 = arith.constant 0 : index
      %184 = vector.load %arg8[%c0_88, %c0_89] : memref<1x128xf32, #tpu.memory_space<vmem>>, vector<1x128xf32>
      %185 = arith.addf %183, %184 : vector<1x128xf32>
      %186 = arith.addf %181, %185 : vector<1x128xf32>
      %cst_90 = arith.constant 0.000000e+00 : f32
      %187 = vector.broadcast %cst_90 : f32 to vector<1x128xf32>
      %188 = arith.maximumf %186, %187 : vector<1x128xf32>
      %189 = math.absf %186 : vector<1x128xf32>
      %cst_91 = arith.constant 0.000000e+00 : f32
      %190 = vector.broadcast %cst_91 : f32 to vector<1x128xf32>
      %191 = arith.subf %190, %189 : vector<1x128xf32>
      %192 = math.exp %191 : vector<1x128xf32>
      %cst_92 = arith.constant 1.000000e+00 : f32
      %193 = vector.broadcast %cst_92 : f32 to vector<1x128xf32>
      %194 = arith.addf %193, %192 : vector<1x128xf32>
      %195 = math.log %194 : vector<1x128xf32>
      %196 = arith.addf %188, %195 : vector<1x128xf32>
      %cst_93 = arith.constant 2.400000e+01 : f32
      %197 = vector.broadcast %cst_93 : f32 to vector<1x128xf32>
      %198 = arith.divf %196, %197 : vector<1x128xf32>
      %c0_94 = arith.constant 0 : index
      %c0_95 = arith.constant 0 : index
      %199 = vector.load %arg7[%c0_94, %c0_95] : memref<1x128xf32, #tpu.memory_space<vmem>>, vector<1x128xf32>
      %cst_96 = arith.constant 0.000000e+00 : f32
      %200 = vector.broadcast %cst_96 : f32 to vector<1x128xf32>
      %201 = arith.cmpf ogt, %199, %200 : vector<1x128xf32>
      %c0_97 = arith.constant 0 : index
      %c0_98 = arith.constant 0 : index
      %202 = vector.load %arg10[%c0_97, %c0_98] : memref<1x128xf32, #tpu.memory_space<vmem>>, vector<1x128xf32>
      %cst_99 = arith.constant 0.000000e+00 : f32
      %203 = vector.broadcast %cst_99 : f32 to vector<1x128xf32>
      %204 = arith.cmpf ogt, %202, %203 : vector<1x128xf32>
      %205 = arith.andi %201, %204 : vector<1x128xi1>
      %cst_100 = arith.constant 1.000000e+00 : f32
      %cst_101 = arith.constant 0.000000e+00 : f32
      %206 = vector.broadcast %cst_100 : f32 to vector<1x128xf32>
      %207 = vector.broadcast %cst_101 : f32 to vector<1x128xf32>
      %208 = arith.select %205, %206, %207 : vector<1x128xi1>, vector<1x128xf32>
      %209 = arith.mulf %198, %208 : vector<1x128xf32>
      %210 = vector.shape_cast %209 : vector<1x128xf32> to vector<1x1x128xf32>
      %cst_102 = arith.constant dense<0.000000e+00> : vector<1xf32>
      %211 = vector.multi_reduction <add>, %210, %cst_102 [1, 2] : vector<1x1x128xf32> to vector<1xf32>
      %212 = vector.shape_cast %211 : vector<1xf32> to vector<1x1x1xf32>
      %213 = vector.extract %212[0, 0, 0] : f32 from vector<1x1x1xf32>
      %214 = vector.shape_cast %208 : vector<1x128xf32> to vector<1x1x128xf32>
      %cst_103 = arith.constant dense<0.000000e+00> : vector<1xf32>
      %215 = vector.multi_reduction <add>, %214, %cst_103 [1, 2] : vector<1x1x128xf32> to vector<1xf32>
      %216 = vector.shape_cast %215 : vector<1xf32> to vector<1x1x1xf32>
      %217 = vector.extract %216[0, 0, 0] : f32 from vector<1x1x1xf32>
      %cst_104 = arith.constant 1.000000e+00 : f32
      %218 = arith.maximumf %217, %cst_104 : f32
      %219 = arith.divf %213, %218 : f32
      %c0_105 = arith.constant 0 : index
      %220 = memref.load %arg11[%c0_105] : memref<2xf32, #tpu.memory_space<smem>>
      %c1_106 = arith.constant 1 : index
      %221 = memref.load %arg11[%c1_106] : memref<2xf32, #tpu.memory_space<smem>>
      %cst_107 = arith.constant 1.000000e+00 : f32
      %222 = arith.maximumf %221, %cst_107 : f32
      %223 = arith.divf %220, %222 : f32
      %224 = arith.addf %223, %219 : f32
      %cst_108 = arith.constant 5.000000e-01 : f32
      %225 = arith.mulf %cst_108, %224 : f32
      %c0_109 = arith.constant 0 : index
      %226 = memref.load %arg4[%c0_109] : memref<1xf32, #tpu.memory_space<smem>>
      memref.store %225, %arg4[%c0_109] : memref<1xf32, #tpu.memory_space<smem>>
    } else {
    }
    return
  }
  func.func @transform_0(%arg0: i32) -> (i32, i32) {
    %c0_i32 = arith.constant 0 : i32
    %c0_i32_0 = arith.constant 0 : i32
    return %arg0, %c0_i32 : i32, i32
  }
  func.func @transform_1(%arg0: i32) -> (i32, i32) {
    %c0_i32 = arith.constant 0 : i32
    %c0_i32_0 = arith.constant 0 : i32
    %c0_i32_1 = arith.constant 0 : i32
    return %c0_i32, %c0_i32_0 : i32, i32
  }
  func.func @transform_2(%arg0: i32) -> (i32, i32) {
    %c0_i32 = arith.constant 0 : i32
    %c0_i32_0 = arith.constant 0 : i32
    return %arg0, %c0_i32 : i32, i32
  }
  func.func @transform_3(%arg0: i32) -> i32 {
    %c0_i32 = arith.constant 0 : i32
    %c0_i32_0 = arith.constant 0 : i32
    return %c0_i32 : i32
  }
}

</mosaic_0001>

<bundles_post_ra>
// kernel: tpu_custom_call.1
= control target key start
LH: loop header
LB: loop body
LE: loop exit
PB: predicated region body
PF: predicated region fallthrough
CT: control target
= control target key end

     0   :  { %8 = vsyncpa [#allocation10], 0  ;;  %s1496_s0 = inlined_call_operand.hbm [shape: f32[32,128], index: 0, kind: input, shape index: {}]   ;;  %s1497_s1 = inlined_call_operand.hbm [shape: f32[128,128], index: 1, kind: input, shape index: {}]   ;;  %s1498_s2 = inlined_call_operand.hbm [shape: f32[32,128], index: 2, kind: input, shape index: {}]   ;;  %s1499_s3 = inlined_call_operand.hbm [shape: f32[1], index: 3, kind: output, shape index: {}]  }
   0x1   :  { %9 = vsyncpa [#allocation13], 0 }
   0x2   :  { %10 = vsyncpa [#allocation11], 0  ;;  %s1111_s12 = smov [#allocation12]   ;;  %s1112_s14 = smov [#allocation9]  }
   0x3   :  { %s28_s13 = sshll.u32 %s1111_s12, 4  ;;  %s16_s15 = sshll.u32 %s1112_s14, 4  ;;  %s29_s13 = int_to_ptr.vmem [resolvable:$true] %s28_s13  ;;  %s1140_s15 = int_to_ptr.vmem [resolvable:$true] %s16_s15 }
   0x4   :  { %s1029_s18 = scalar_lea.hbm %s1497_s1, 2048 }
   0x5   :  { %p1030_p0 = scmp.ne.s32.totalorder %s1497_s1, %s1029_s18  ;;  %p1033_p1 = scmp.lt.u32.totalorder %s1029_s18, %s1497_s1 }
   0x7   :  { %p1035_p2 = pnand %p1033_p1, %p1030_p0 }
   0x9   :  { %1038 = shalt.err (!%p1035_p2)
}
   0xa   :  { %s1039_s23 = scalar_lea.vmem %s29_s13, 2048  ;;  %p1044_p4 = scmp.lt.s32.totalorder %s29_s13, %s29_s13 }
   0xb   :  { %p1040_p3 = scmp.ne.s32.totalorder %s29_s13, %s1039_s23  ;;  %p1045_p5 = scmp.lt.s32.totalorder %s1039_s23, %s1039_s23 }
   0xd   :  { %p1046_p6 = por %p1045_p5, %p1044_p4 }
   0xf   :  { %p1047_p7 = pnand %p1046_p6, %p1040_p3 }
  0x11   :  { %1050 = shalt.err (!%p1047_p7)
}
  0x12   :  { %s1113_s24 = smov 128   ;;  %s1114_s25 = smov 8  }
  0x13   :  { %34 = dma.hbm_to_vmem [thread:$0]  %s1497_s1, 2048, %s29_s13, [#allocation13], %s1113_s24, %s1113_s24, %s1114_s25  }
  0x14   :  { %s1051_s30 = scalar_lea.hbm %s1496_s0, 512 }
  0x15   :  { %p1052_p8 = scmp.ne.s32.totalorder %s1496_s0, %s1051_s30  ;;  %p1055_p9 = scmp.lt.u32.totalorder %s1051_s30, %s1496_s0 }
  0x17   :  { %p1057_p10 = pnand %p1055_p9, %p1052_p8 }
  0x19   :  { %1060 = shalt.err (!%p1057_p10)
}
  0x1a   :  { %s1061_s8 = scalar_lea.vmem %s1140_s15, 512  ;;  %p1066_p12 = scmp.lt.s32.totalorder %s1140_s15, %s1140_s15 }
  0x1b   :  { %p1062_p11 = scmp.ne.s32.totalorder %s1140_s15, %s1061_s8  ;;  %p1067_p13 = scmp.lt.s32.totalorder %s1061_s8, %s1061_s8 }
  0x1d   :  { %p1068_p0 = por %p1067_p13, %p1066_p12 }
  0x1f   :  { %p1069_p1 = pnand %p1068_p0, %p1062_p11 }
  0x21   :  { %1072 = shalt.err (!%p1069_p1)
}
  0x22   :  { %22 = dma.hbm_to_vmem [thread:$0]  %s1496_s0, 512, %s1140_s15, [#allocation10], %s1113_s24, %s1113_s24, %s1114_s25  }
  0x23   :  { %s1115_s10 = smov [#allocation14]   ;;  %s1073_s14 = scalar_lea.hbm %s1498_s2, 512 }
  0x24   :  { %s40_s11 = sshll.u32 %s1115_s10, 4  ;;  %p1074_p2 = scmp.ne.s32.totalorder %s1498_s2, %s1073_s14  ;;  %s41_s11 = int_to_ptr.vmem [resolvable:$true] %s40_s11 }
  0x25   :  { %p1077_p3 = scmp.lt.u32.totalorder %s1073_s14, %s1498_s2 }
  0x27   :  { %p1079_p4 = pnand %p1077_p3, %p1074_p2 }
  0x29   :  { %1082 = shalt.err (!%p1079_p4)
}
  0x2a   :  { %s1083_s20 = scalar_lea.vmem %s41_s11, 512  ;;  %p1088_p6 = scmp.lt.s32.totalorder %s41_s11, %s41_s11 }
  0x2b   :  { %p1084_p5 = scmp.ne.s32.totalorder %s41_s11, %s1083_s20  ;;  %p1089_p7 = scmp.lt.s32.totalorder %s1083_s20, %s1083_s20 }
  0x2d   :  { %p1090_p8 = por %p1089_p7, %p1088_p6 }
  0x2f   :  { %p1091_p9 = pnand %p1090_p8, %p1084_p5 }
  0x31   :  { %1094 = shalt.err (!%p1091_p9)
}
  0x32   :  { %46 = dma.hbm_to_vmem [thread:$0]  %s1498_s2, 512, %s41_s11, [#allocation13], %s1113_s24, %s1113_s24, %s1114_s25  }
  0x33   :  { %1105 = dma.done.wait [#allocation10], 512  }
  0x34   :  { %1106 = vsyncadd [#allocation10], 4294966784 }
  0x35   :  { %1107 = dma.done.wait [#allocation13], 2560  }
  0x36   :  { %1108 = vsyncadd [#allocation13], 4294964736  ;;  %v74_v0 = vld [vmem:[#allocation12] sm:$0xff]  ;;  %v75_v1 = vld [vmem:[#allocation12 + $0x8] sm:$0xff]  ;;  %v1116_v28 = vmov 0.0   ;;  %v230_v30 = vlaneseq  ;;  %s1118_s22 = smov 1.0  }
  0x37   :  { %v76_v2 = vld [vmem:[#allocation12 + $0x10] sm:$0xff]  ;;  %v864_v3 = vpack.c.bf16 %v75_v1, %v74_v0  ;;  %v77_v4 = vld [vmem:[#allocation12 + $0x18] sm:$0xff]  ;;  %v70_v6 = vld [vmem:[#allocation9] sm:$0xff]  ;;  %62 = vst [vmem:[#allocation3] sm:$0x1] %v1116_v28  ;;  %s1095_s8 = scalar_lea.hbm %s1499_s3, 16 }
  0x38   :  { %v868_v5 = vpack.c.bf16 %v77_v4, %v76_v2  ;;  %v72_v7 = vld [vmem:[#allocation9 + $0x10] sm:$0xff]  ;;  %v78_v8 = vld [vmem:[#allocation12 + $0x20] sm:$0xff]  ;;  %v79_v9 = vld [vmem:[#allocation12 + $0x28] sm:$0xff]  ;;  %858 = vmatprep.mubr.f32.mxu0 %v70_v6  ;;  %63 = vst [vmem:[#allocation6] sm:$0x1] %v1116_v28  ;;  %v1197_v31 = vand.u32 127, %v230_v30  ;;  %p1096_p10 = scmp.ne.s32.totalorder %s1499_s3, %s1095_s8  ;;  %p1099_p11 = scmp.lt.u32.totalorder %s1095_s8, %s1499_s3 }
  0x39   :  { %865 = vmatprep.subr.bf16.mxu0 %v864_v3  ;;  %896 = vmatprep.subr.bf16.mxu1 %v864_v3  ;;  %v872_v10 = vpack.c.bf16 %v79_v9, %v78_v8  ;;  %v80_v11 = vld [vmem:[#allocation12 + $0x30] sm:$0xff]  ;;  %v81_v12 = vld [vmem:[#allocation12 + $0x38] sm:$0xff]  ;;  %v82_v14 = vld [vmem:[#allocation12 + $0x40] sm:$0xff]  ;;  %64 = vst [vmem:[#allocation4] sm:$0x1] %v1116_v28 }
  0x3a   :  { %867 = vmatpush3.bf16.xpose.msra.mxu0 %v864_v3  ;;  %904 = vmatpush3.bf16.xpose.msra.mxu1 %v864_v3  ;;  %v876_v13 = vpack.c.bf16 %v81_v12, %v80_v11  ;;  %v83_v15 = vld [vmem:[#allocation12 + $0x48] sm:$0xff]  ;;  %v84_v17 = vld [vmem:[#allocation12 + $0x50] sm:$0xff]  ;;  %v85_v18 = vld [vmem:[#allocation12 + $0x58] sm:$0xff]  ;;  %65 = vst [vmem:[#allocation7] sm:$0x1] %v1116_v28  ;;  %vm236_vm2 = vcmp.lt.s32.totalorder %v1197_v31, 32  ;;  %p1101_p12 = pnand %p1099_p11, %p1096_p10 }
  0x3b   :  { %869 = vmatprep.subr.bf16.mxu0 %v868_v5  ;;  %897 = vmatprep.subr.bf16.mxu1 %v868_v5  ;;  %v880_v16 = vpack.c.bf16 %v83_v15, %v82_v14  ;;  %v884_v19 = vpack.c.bf16 %v85_v18, %v84_v17  ;;  %v86_v20 = vld [vmem:[#allocation12 + $0x60] sm:$0xff]  ;;  %v87_v21 = vld [vmem:[#allocation12 + $0x68] sm:$0xff]  ;;  %v88_v23 = vld [vmem:[#allocation12 + $0x70] sm:$0xff]  ;;  %v1117_v29 = vmov -1e+30   ;;  %v792_v37 = vsel %vm236_vm2, 1.0, %v1116_v28 }
  0x3c   :  { %861 = vmatprep.mubr.f32.mxu1 %v72_v7  ;;  %v888_v22 = vpack.c.bf16 %v87_v21, %v86_v20  ;;  %v89_v24 = vld [vmem:[#allocation12 + $0x78] sm:$0xff]  ;;  %v71_v26 = vld [vmem:[#allocation9 + $0x8] sm:$0xff]  ;;  %61 = vst [vmem:[#allocation5] sm:$0x1] %v1117_v29  ;;  %60 = vst [vmem:[#allocation2] sm:$0x1] %v1117_v29 }
  0x3d   :  { %v892_v25 = vpack.c.bf16 %v89_v24, %v88_v23  ;;  %v73_v27 = vld [vmem:[#allocation9 + $0x18] sm:$0xff]  ;;  %v91_v32 = vld [vmem:[#allocation14 + $0x8] sm:$0xff]  ;;  %v90_v33 = vld [vmem:[#allocation14] sm:$0xff] }
  0x3e   :  { %vm272_vm0 = vcmp.eq.f32.partialorder %v91_v32, 0.0  ;;  %vm271_vm1 = vcmp.eq.f32.partialorder %v90_v33, 0.0  ;;  %v92_v36 = vld [vmem:[#allocation14 + $0x10] sm:$0xff]  ;;  %v93_v41 = vld [vmem:[#allocation14 + $0x18] sm:$0xff]  ;;  %vm260_vm5 = vcmp.gt.f32.partialorder %v91_v32, 0.1 }
  0x3f   :  { %v276_v34 = vsel %vm272_vm0, 1.0, %v1116_v28  ;;  %v275_v35 = vsel %vm271_vm1, 1.0, %v1116_v28  ;;  %vm273_vm3 = vcmp.eq.f32.partialorder %v92_v36, 0.0  ;;  %vm274_vm4 = vcmp.eq.f32.partialorder %v93_v41, 0.0 }
  0x40   :  { %v1205_v38 = vmul.f32 %v792_v37, %v276_v34  ;;  %v1207_v39 = vmul.f32 %v792_v37, %v275_v35  ;;  %v277_v40 = vsel %vm273_vm3, 1.0, %v1116_v28  ;;  %v278_v44 = vsel %vm274_vm4, 1.0, %v1116_v28  ;;  %v639_v8 = vld [vmem:[#allocation4] sm:$0x1] }
  0x41   :  { %v1212_v43 = vmul.f32 %v792_v37, %v277_v40  ;;  %v1216_v46 = vmul.f32 %v792_v37, %v278_v44  ;;  %vm259_vm6 = vcmp.gt.f32.partialorder %v90_v33, 0.1  ;;  %v264_v51 = vsel %vm260_vm5, 1.0, %v1116_v28  ;;  %v697_v0 = vld [vmem:[#allocation7] sm:$0x1] }
  0x42   :  { %871 = vmatpush3.bf16.xpose.msra.mxu0 %v868_v5  ;;  %905 = vmatpush3.bf16.xpose.msra.mxu1 %v868_v5  ;;  %v698_v42 = vadd.f32 %v1205_v38, %v1207_v39  ;;  %v263_v52 = vsel %vm259_vm6, 1.0, %v1116_v28  ;;  %vm261_vm7 = vcmp.gt.f32.partialorder %v92_v36, 0.1  ;;  %v1221_v54 = vmul.f32 %v792_v37, %v264_v51 }
  0x43   :  { %873 = vmatprep.subr.bf16.mxu0 %v872_v10  ;;  %898 = vmatprep.subr.bf16.mxu1 %v872_v10  ;;  %v1223_v55 = vmul.f32 %v792_v37, %v263_v52  ;;  %v265_v56 = vsel %vm261_vm7, 1.0, %v1116_v28  ;;  %vm262_vm8 = vcmp.gt.f32.partialorder %v93_v41, 0.1  ;;  %v339_v44 = vsub.f32 1.0, %v1207_v39 }
  0x44   :  { %v699_v45 = vadd.f32 %v698_v42, %v1212_v43  ;;  %v1228_v59 = vmul.f32 %v792_v37, %v265_v56  ;;  %v266_v60 = vsel %vm262_vm8, 1.0, %v1116_v28  ;;  %v1236_v11 = vmul.f32 %v1221_v54, %v91_v32 }
  0x45   :  { %v640_v57 = vadd.f32 %v1221_v54, %v1223_v55  ;;  %v1232_v63 = vmul.f32 %v792_v37, %v266_v60  ;;  %v1239_v12 = vmul.f32 %v1223_v55, %v90_v33  ;;  %v284_v40 = vsub.f32 1.0, %v1221_v54 }
  0x46   :  { %v700_v47 = vadd.f32 %v699_v45, %v1216_v46  ;;  %933 = vrsqrt.f32 %v1236_v11  ;;  %vm316_vm9 = vcmp.eq.f32.partialorder %v1236_v11, inf  ;;  %v283_v45 = vsub.f32 1.0, %v1223_v55 }
  0x47   :  { %v641_v61 = vadd.f32 %v640_v57, %v1228_v59  ;;  %935 = vrsqrt.f32 %v1239_v12  ;;  %v1247_v14 = vmul.f32 %v1232_v63, %v93_v41  ;;  %vm309_vm10 = vcmp.eq.f32.partialorder %v1239_v12, inf }
  0x48   :  { %v701_v48 = vrot.slane %v700_v47, 4  ;;  %v319_v51 = vand.u32 2147483648, %v1236_v11  ;;  %v285_v52 = vsub.f32 1.0, %v1228_v59  ;;  %vm318_vm12 = vcmp.eq.f32.partialorder %v1236_v11, 0.0 }
  0x49   :  { %v642_v1 = vadd.f32 %v641_v61, %v1232_v63  ;;  %v312_v57 = vand.u32 2147483648, %v1239_v12  ;;  %vm311_vm13 = vcmp.eq.f32.partialorder %v1239_v12, 0.0  ;;  %vm330_vm15 = vcmp.eq.f32.partialorder %v1247_v14, inf }
  0x4a   :  { %875 = vmatpush3.bf16.xpose.msra.mxu0 %v872_v10  ;;  %906 = vmatpush3.bf16.xpose.msra.mxu1 %v872_v10  ;;  %v702_v49 = vadd.f32 %v701_v48, %v700_v47 }
  0x4b   :  { %877 = vmatprep.subr.bf16.mxu0 %v876_v13  ;;  %899 = vmatprep.subr.bf16.mxu1 %v876_v13  ;;  %v643_v3 = vrot.slane %v642_v1, 4 }
  0x4c   :  { %v703_v50 = vrot.slane %v702_v49, 2 }
  0x4d   :  { %v644_v4 = vadd.f32 %v643_v3, %v642_v1  ;;  %v287_v3 = vmul.f32 100000.0, %v283_v45 }
  0x4e   :  { %v704_v53 = vadd.f32 %v703_v50, %v702_v49  ;;  %v341_v49 = vsub.f32 1.0, %v1212_v43 }
  0x4f   :  { %v645_v5 = vrot.slane %v644_v4, 2 }
  0x50   :  { %v705_v58 = vrot.slane %v704_v53, 1  ;;  %v934_v29 = vpop.eup %933 }
  0x51   :  { %v646_v6 = vadd.f32 %v645_v5, %v644_v4  ;;  %v936_v34 = vpop.eup %935  ;;  %v315_v42 = vmul.f32 %v934_v29, %v1236_v11  ;;  %v345_v4 = vmul.f32 100000.0, %v341_v49  ;;  %v1288_v5 = vmul.f32 100000.0, %v285_v52 }
  0x52   :  { %879 = vmatpush3.bf16.xpose.msra.mxu0 %v876_v13  ;;  %907 = vmatpush3.bf16.xpose.msra.mxu1 %v876_v13  ;;  %v706_v62 = vadd.f32 %v705_v58, %v704_v53  ;;  %v1242_v13 = vmul.f32 %v1228_v59, %v92_v36  ;;  %v308_v47 = vmul.f32 %v936_v34, %v1239_v12  ;;  %v342_v53 = vsub.f32 1.0, %v1216_v46 }
  0x53   :  { %881 = vmatprep.subr.bf16.mxu0 %v880_v16  ;;  %900 = vmatprep.subr.bf16.mxu1 %v880_v16  ;;  %v647_v7 = vrot.slane %v646_v6, 1  ;;  %v317_v56 = vsel %vm316_vm9, %v1236_v11, %v315_v42  ;;  %v286_v58 = vsub.f32 1.0, %v1232_v63  ;;  %vm332_vm9 = vcmp.eq.f32.partialorder %v1247_v14, 0.0 }
  0x54   :  { %v707_v2 = vadd.f32 %v706_v62, %v697_v0  ;;  %937 = vrsqrt.f32 %v1242_v13  ;;  %vm323_vm11 = vcmp.eq.f32.partialorder %v1242_v13, inf  ;;  %v310_v60 = vsel %vm309_vm10, %v1239_v12, %v308_v47 }
  0x55   :  { %v648_v9 = vadd.f32 %v647_v7, %v646_v6  ;;  %939 = vrsqrt.f32 %v1247_v14  ;;  %v326_v61 = vand.u32 2147483648, %v1242_v13  ;;  %v288_v0 = vmul.f32 100000.0, %v284_v40 }
  0x56   :  { %708 = vst [vmem:[#allocation7] sm:$0x1] %v707_v2  ;;  %vm325_vm14 = vcmp.eq.f32.partialorder %v1242_v13, 0.0  ;;  %v343_v2 = vmul.f32 100000.0, %v339_v44  ;;  %v320_v6 = vsel %vm318_vm12, %v319_v51, %v317_v56  ;;  %v1290_v7 = vsel %vm311_vm13, %v312_v57, %v310_v60 }
  0x57   :  { %v649_v10 = vadd.f32 %v648_v9, %v639_v8  ;;  %v346_v8 = vmul.f32 100000.0, %v342_v53  ;;  %v1292_v9 = vmul.f32 100000.0, %v286_v58 }
  0x59   :  { %650 = vst [vmem:[#allocation4] sm:$0x1] %v649_v10 }
  0x5a   :  { %883 = vmatpush3.bf16.xpose.msra.mxu0 %v880_v16  ;;  %908 = vmatpush3.bf16.xpose.msra.mxu1 %v880_v16 }
  0x5b   :  { %885 = vmatprep.subr.bf16.mxu0 %v884_v19  ;;  %901 = vmatprep.subr.bf16.mxu1 %v884_v19 }
  0x5e   :  { %v938_v37 = vpop.eup %937 }
  0x5f   :  { %v940_v48 = vpop.eup %939  ;;  %v322_v50 = vmul.f32 %v938_v37, %v1242_v13 }
  0x60   :  { %v329_v62 = vmul.f32 %v940_v48, %v1247_v14 }
  0x61   :  { %v324_v1 = vsel %vm323_vm11, %v1242_v13, %v322_v50  ;;  %v333_v13 = vand.u32 2147483648, %v1247_v14  ;;  %vm553_vm11 = vcmask 7168  }
  0x62   :  { %887 = vmatpush3.bf16.xpose.msra.mxu0 %v884_v19  ;;  %909 = vmatpush3.bf16.xpose.msra.mxu1 %v884_v19  ;;  %v1295_v11 = vsel %vm325_vm14, %v326_v61, %v324_v1  ;;  %v1298_v12 = vsel %vm330_vm15, %v1247_v14, %v329_v62 }
  0x63   :  { %889 = vmatprep.subr.bf16.mxu0 %v888_v22  ;;  %902 = vmatprep.subr.bf16.mxu1 %v888_v22 }
  0x6a   :  { %891 = vmatpush3.bf16.xpose.msra.mxu0 %v888_v22  ;;  %910 = vmatpush3.bf16.xpose.msra.mxu1 %v888_v22 }
  0x6b   :  { %893 = vmatprep.subr.bf16.mxu0 %v892_v25  ;;  %903 = vmatprep.subr.bf16.mxu1 %v892_v25 }
  0x72   :  { %895 = vmatpush3.bf16.xpose.msra.mxu0 %v892_v25  ;;  %911 = vmatpush3.bf16.xpose.msra.mxu1 %v892_v25 }
  0x79   :  { %859 = vmatmul.mubr.f32.vlgmr.msra.gmra.mrb[0].mxu0 %v71_v26  ;;  %862 = vmatmul.mubr.f32.vlgmr.msra.gmra.mrb[0].mxu1 %v73_v27  ;;  %v340_v27 = vsub.f32 1.0, %v1205_v38 }
  0x7b   :  { %v344_v41 = vmul.f32 100000.0, %v340_v27 }
 0x14c   :  { %v860_v15 = vpop.f32.mrb[0].mxu0  ;;  %v863_v16 = vpop.f32.mrb[0].mxu1 }
 0x14d   :  { %v180_v17 = vmul.f32 2.0, %v860_v15  ;;  %v182_v18 = vmul.f32 2.0, %v863_v16  ;;  %v160_v19 = vpop.f32.mrb[1].mxu0  ;;  %v170_v20 = vpop.f32.mrb[1].mxu1 }
 0x14e   :  { %v179_v21 = vmul.f32 2.0, %v160_v19  ;;  %v181_v22 = vmul.f32 2.0, %v170_v20 }
 0x14f   :  { %v184_v23 = vsub.f32 2.0, %v180_v17  ;;  %v186_v24 = vsub.f32 2.0, %v182_v18 }
 0x150   :  { %v183_v25 = vsub.f32 2.0, %v179_v21  ;;  %v185_v26 = vsub.f32 2.0, %v181_v22 }
 0x151   :  { %v1252_v32 = vmax.f32 %v184_v23, 0.0  ;;  %v1254_v33 = vmax.f32 %v186_v24, 0.0 }
 0x152   :  { %v1256_v35 = vmax.f32 %v183_v25, 0.0  ;;  %v1258_v36 = vmax.f32 %v185_v26, 0.0 }
 0x153   :  { %941 = vrsqrt.f32 %v1252_v32  ;;  %vm200_vm0 = vcmp.eq.f32.partialorder %v1252_v32, inf  ;;  %vm202_vm1 = vcmp.eq.f32.partialorder %v1252_v32, 0.0  ;;  %v203_v17 = vand.u32 2147483648, %v1252_v32 }
 0x154   :  { %943 = vrsqrt.f32 %v1254_v33  ;;  %vm193_vm3 = vcmp.eq.f32.partialorder %v1256_v35, inf  ;;  %vm195_vm4 = vcmp.eq.f32.partialorder %v1256_v35, 0.0  ;;  %v196_v19 = vand.u32 2147483648, %v1256_v35 }
 0x155   :  { %945 = vrsqrt.f32 %v1256_v35  ;;  %vm207_vm5 = vcmp.eq.f32.partialorder %v1258_v36, inf  ;;  %vm214_vm6 = vcmp.eq.f32.partialorder %v1254_v33, inf  ;;  %vm216_vm7 = vcmp.eq.f32.partialorder %v1254_v33, 0.0 }
 0x156   :  { %947 = vrsqrt.f32 %v1258_v36  ;;  %v217_v27 = vand.u32 2147483648, %v1254_v33  ;;  %v210_v44 = vand.u32 2147483648, %v1258_v36  ;;  %vm209_vm8 = vcmp.eq.f32.partialorder %v1258_v36, 0.0 }
 0x15d   :  { %v942_v10 = vpop.eup %941 }
 0x15e   :  { %v944_v15 = vpop.eup %943  ;;  %v199_v16 = vmul.f32 %v942_v10, %v1252_v32 }
 0x15f   :  { %v946_v18 = vpop.eup %945  ;;  %v213_v20 = vmul.f32 %v944_v15, %v1254_v33 }
 0x160   :  { %v948_v21 = vpop.eup %947  ;;  %v201_v22 = vsel %vm200_vm0, %v1252_v32, %v199_v16  ;;  %v192_v23 = vmul.f32 %v946_v18, %v1256_v35 }
 0x161   :  { %v204_v24 = vsel %vm202_vm1, %v203_v17, %v201_v22  ;;  %v206_v25 = vmul.f32 %v948_v21, %v1258_v36  ;;  %v215_v26 = vsel %vm214_vm6, %v1254_v33, %v213_v20 }
 0x162   :  { %v348_v29 = vadd.f32 %v344_v41, %v204_v24  ;;  %v376_v34 = vsub.f32 1.4, %v204_v24  ;;  %v292_v37 = vsub.f32 %v204_v24, %v288_v0  ;;  %v801_v40 = vadd.f32 -0.1, %v204_v24 }
 0x163   :  { %v194_v32 = vsel %vm193_vm3, %v1256_v35, %v192_v23  ;;  %v208_v42 = vsel %vm207_vm5, %v1258_v36, %v206_v25  ;;  %v218_v45 = vsel %vm216_vm7, %v217_v27, %v215_v26 }
 0x164   :  { %v352_v47 = vsub.f32 1.4, %v348_v29  ;;  %v380_v48 = vmul.f32 24.0, %v376_v34  ;;  %v797_v49 = vadd.f32 -0.1, %v292_v37  ;;  %v364_v33 = vmul.f32 24.0, %v801_v40 }
 0x165   :  { %v197_v41 = vsel %vm195_vm4, %v196_v19, %v194_v32  ;;  %v211_v50 = vsel %vm209_vm8, %v210_v44, %v208_v42  ;;  %v350_v51 = vadd.f32 %v346_v8, %v218_v45  ;;  %v378_v62 = vsub.f32 1.4, %v218_v45 }
 0x166   :  { %v356_v52 = vmax.f32 %v352_v47, 0.0  ;;  %v300_v53 = vmax.f32 %v797_v49, 0.0  ;;  %v347_v56 = vadd.f32 %v343_v2, %v197_v41  ;;  %v375_v57 = vsub.f32 1.4, %v197_v41 }
 0x167   :  { %v291_v58 = vsub.f32 %v197_v41, %v287_v3  ;;  %v349_v60 = vadd.f32 %v345_v4, %v211_v50  ;;  %v377_v61 = vsub.f32 1.4, %v211_v50  ;;  %v800_v15 = vadd.f32 -0.1, %v197_v41 }
 0x168   :  { %v384_v0 = vmul.f32 %v380_v48, %v356_v52  ;;  %v336_v1 = vmul.f32 %v320_v6, %v300_v53  ;;  %v351_v10 = vsub.f32 1.4, %v347_v56  ;;  %v379_v16 = vmul.f32 24.0, %v375_v57 }
 0x169   :  { %v796_v36 = vadd.f32 -0.1, %v291_v58  ;;  %v353_v17 = vsub.f32 1.4, %v349_v60  ;;  %v381_v18 = vmul.f32 24.0, %v377_v61  ;;  %v293_v2 = vsub.f32 %v211_v50, %v1288_v5 }
 0x16a   :  { %v1328_v35 = vsel %vm236_vm2, %v384_v0, -1e+30  ;;  %v368_v8 = vmul.f32 %v364_v33, %v336_v1  ;;  %v355_v19 = vmax.f32 %v351_v10, 0.0  ;;  %v802_v20 = vadd.f32 -0.1, %v211_v50 }
 0x16b   :  { %465 = vmax.xlane.f32.xlu1 %v1328_v35  ;;  %v299_v3 = vmax.f32 %v796_v36, 0.0  ;;  %v357_v4 = vmax.f32 %v353_v17, 0.0  ;;  %v354_v6 = vsub.f32 1.4, %v350_v51  ;;  %v363_v23 = vmul.f32 24.0, %v800_v15 }
 0x16c   :  { %v1334_v21 = vsel %vm236_vm2, %v368_v8, -1e+30  ;;  %v383_v22 = vmul.f32 %v379_v16, %v355_v19  ;;  %v798_v24 = vadd.f32 -0.1, %v293_v2  ;;  %v382_v5 = vmul.f32 24.0, %v378_v62 }
 0x16d   :  { %425 = vmax.xlane.f32.xlu0 %v1334_v21  ;;  %v335_v25 = vmul.f32 %v1290_v7, %v299_v3  ;;  %v385_v26 = vmul.f32 %v381_v18, %v357_v4  ;;  %v358_v27 = vmax.f32 %v354_v6, 0.0  ;;  %v294_v37 = vsub.f32 %v218_v45, %v1292_v9  ;;  %v660_v16 = vld [vmem:[#allocation5] sm:$0x1] }
 0x16e   :  { %v1340_v29 = vsel %vm236_vm2, %v383_v22, -1e+30  ;;  %v301_v34 = vmax.f32 %v798_v24, 0.0  ;;  %v365_v7 = vmul.f32 24.0, %v802_v20  ;;  %v803_v49 = vadd.f32 -0.1, %v218_v45 }
 0x16f   :  { %463 = vmax.xlane.f32.xlu1 %v1340_v29  ;;  %v367_v40 = vmul.f32 %v363_v23, %v335_v25  ;;  %v1347_v32 = vsel %vm236_vm2, %v385_v26, -1e+30  ;;  %v386_v42 = vmul.f32 %v382_v5, %v358_v27  ;;  %v651_v44 = vmax.f32 %v1340_v29, %v1328_v35 }
 0x170   :  { %v337_v47 = vmul.f32 %v1295_v11, %v301_v34  ;;  %v799_v48 = vadd.f32 -0.1, %v294_v37  ;;  %v334_v41 = vsel %vm332_vm9, %v333_v13, %v1298_v12  ;;  %v366_v53 = vmul.f32 24.0, %v803_v49 }
 0x171   :  { %v1354_v9 = vsel %vm236_vm2, %v367_v40, -1e+30  ;;  %v1358_v33 = vsel %vm236_vm2, %v386_v42, -1e+30  ;;  %v611_v0 = vshrl.u32 %v230_v30, 7 }
 0x172   :  { %423 = vmax.xlane.f32.xlu0 %v1354_v9  ;;  %v369_v50 = vmul.f32 %v365_v7, %v337_v47  ;;  %v652_v11 = vmax.f32 %v1347_v32, %v1358_v33  ;;  %v302_v51 = vmax.f32 %v799_v48, 0.0  ;;  %v593_v13 = vmax.f32 %v1354_v9, %v1334_v21  ;;  %v602_v30 = vld [vmem:[#allocation2] sm:$0x1] }
 0x173   :  { %467 = vmax.xlane.f32.xlu1 %v1347_v32  ;;  %v612_v17 = vsub.s32 0, %v611_v0 }
 0x174   :  { %v653_v45 = vmax.f32 %v651_v44, %v652_v11  ;;  %v338_v52 = vmul.f32 %v334_v41, %v302_v51  ;;  %v1369_v56 = vsel %vm236_vm2, %v369_v50, -1e+30 }
 0x176   :  { %427 = vmax.xlane.f32.xlu0 %v1369_v56  ;;  %v654_v14 = vrot.slane %v653_v45, 4  ;;  %v370_v12 = vmul.f32 %v366_v53, %v338_v52 }
 0x177   :  { %469 = vmax.xlane.f32.xlu1 %v1358_v33 }
 0x178   :  { %v655_v57 = vmax.f32 %v653_v45, %v654_v14  ;;  %v1377_v58 = vsel %vm236_vm2, %v370_v12, -1e+30 }
 0x179   :  { %v594_v60 = vmax.f32 %v1369_v56, %v1377_v58 }
 0x17a   :  { %v656_v61 = vrot.slane %v655_v57, 2  ;;  %429 = vmax.xlane.f32.xlu0 %v1377_v58 }
 0x17b   :  { %v595_v62 = vmax.f32 %v593_v13, %v594_v60 }
 0x17c   :  { %v657_v1 = vmax.f32 %v655_v57, %v656_v61 }
 0x17d   :  { %v596_v10 = vrot.slane %v595_v62, 4 }
 0x17e   :  { %v658_v15 = vrot.slane %v657_v1, 1 }
 0x17f   :  { %v597_v36 = vmax.f32 %v595_v62, %v596_v10 }
 0x180   :  { %v659_v18 = vmax.f32 %v657_v1, %v658_v15 }
 0x181   :  { %v598_v8 = vrot.slane %v597_v36, 2 }
 0x182   :  { %v661_v31 = vmax.f32 %v660_v16, %v659_v18 }
 0x183   :  { %v599_v19 = vmax.f32 %v597_v36, %v598_v8 }
 0x184   :  { %v671_v2 = vrot.slane %v661_v31, %v612_v17  ;;  %696 = vst [vmem:[#allocation5] sm:$0x1] %v661_v31  ;;  %v663_v49 = vsub.f32 %v660_v16, %v661_v31  ;;  %v662_v31 = vld [vmem:[#allocation6] sm:$0x1] }
 0x185   :  { %v600_v3 = vrot.slane %v599_v19, 1 }
 0x186   :  { %v673_v4 = vsub.f32 %v1340_v29, %v671_v2  ;;  %v674_v20 = vsub.f32 %v1328_v35, %v671_v2  ;;  %v675_v6 = vsub.f32 %v1347_v32, %v671_v2  ;;  %v676_v22 = vsub.f32 %v1358_v33, %v671_v2 }
 0x187   :  { %v601_v23 = vmax.f32 %v599_v19, %v600_v3  ;;  %v664_v51 = vmul.f32 1.442695, %v663_v49 }
 0x188   :  { %v677_v24 = vmul.f32 1.442695, %v673_v4  ;;  %v679_v25 = vmul.f32 1.442695, %v674_v20  ;;  %v681_v26 = vmul.f32 1.442695, %v675_v6 }
 0x189   :  { %v603_v27 = vmax.f32 %v602_v30, %v601_v23  ;;  %v683_v5 = vmul.f32 1.442695, %v676_v22 }
 0x18a   :  { %949 = vpow2.f32 %v677_v24  ;;  %v604_v24 = vld [vmem:[#allocation3] sm:$0x1] }
 0x18b   :  { %951 = vpow2.f32 %v679_v25  ;;  %v613_v34 = vrot.slane %v603_v27, %v612_v17  ;;  %638 = vst [vmem:[#allocation2] sm:$0x1] %v603_v27  ;;  %v605_v14 = vsub.f32 %v602_v30, %v603_v27 }
 0x18c   :  { %953 = vpow2.f32 %v681_v26 }
 0x18d   :  { %v615_v37 = vsub.f32 %v1354_v9, %v613_v34  ;;  %v616_v40 = vsub.f32 %v1334_v21, %v613_v34  ;;  %v617_v7 = vsub.f32 %v1369_v56, %v613_v34  ;;  %v618_v42 = vsub.f32 %v1377_v58, %v613_v34 }
 0x18e   :  { %955 = vpow2.f32 %v683_v5  ;;  %v606_v62 = vmul.f32 1.442695, %v605_v14 }
 0x18f   :  { %v619_v44 = vmul.f32 1.442695, %v615_v37  ;;  %v621_v47 = vmul.f32 1.442695, %v616_v40  ;;  %v623_v48 = vmul.f32 1.442695, %v617_v7 }
 0x190   :  { %v625_v41 = vmul.f32 1.442695, %v618_v42 }
 0x191   :  { %957 = vpow2.f32 %v619_v44 }
 0x192   :  { %959 = vpow2.f32 %v621_v47 }
 0x193   :  { %961 = vpow2.f32 %v623_v48 }
 0x194   :  { %v950_v50 = vpop.eup %949  ;;  %963 = vpow2.f32 %v625_v41 }
 0x195   :  { %v952_v11 = vpop.eup %951  ;;  %965 = vpow2.f32 %v664_v51 }
 0x196   :  { %v685_v45 = vadd.f32 %v952_v11, %v950_v50  ;;  %v954_v52 = vpop.eup %953  ;;  %967 = vpow2.f32 %v606_v62 }
 0x198   :  { %v686_v53 = vadd.f32 %v954_v52, %v685_v45  ;;  %v956_v12 = vpop.eup %955 }
 0x19a   :  { %v687_v13 = vadd.f32 %v956_v12, %v686_v53 }
 0x19b   :  { %v958_v57 = vpop.eup %957 }
 0x19c   :  { %v960_v60 = vpop.eup %959  ;;  %v688_v61 = vrot.slane %v687_v13, 4 }
 0x19d   :  { %v627_v0 = vadd.f32 %v960_v60, %v958_v57  ;;  %v962_v1 = vpop.eup %961 }
 0x19e   :  { %v689_v10 = vadd.f32 %v688_v61, %v687_v13  ;;  %v964_v16 = vpop.eup %963 }
 0x19f   :  { %v628_v15 = vadd.f32 %v962_v1, %v627_v0  ;;  %v966_v8 = vpop.eup %965 }
 0x1a0   :  { %v690_v36 = vrot.slane %v689_v10, 2  ;;  %v666_v4 = vmul.f32 %v966_v8, %v662_v31  ;;  %v968_v23 = vpop.eup %967 }
 0x1a1   :  { %v629_v17 = vadd.f32 %v964_v16, %v628_v15  ;;  %v608_v26 = vmul.f32 %v968_v23, %v604_v24 }
 0x1a2   :  { %v691_v18 = vadd.f32 %v690_v36, %v689_v10 }
 0x1a3   :  { %v630_v19 = vrot.slane %v629_v17, 4 }
 0x1a4   :  { %v692_v2 = vrot.slane %v691_v18, 1 }
 0x1a5   :  { %v631_v3 = vadd.f32 %v630_v19, %v629_v17  ;;  %v720_v17 = vld [vmem:[#allocation5] sm:$0x1] }
 0x1a6   :  { %v693_v20 = vadd.f32 %v692_v2, %v691_v18 }
 0x1a7   :  { %v632_v6 = vrot.slane %v631_v3, 2 }
 0x1a8   :  { %v694_v30 = vadd.f32 %v693_v20, %v666_v4 }
 0x1a9   :  { %v633_v22 = vadd.f32 %v632_v6, %v631_v3 }
 0x1aa   :  { %695 = vst [vmem:[#allocation6] sm:$0x1] %v694_v30 }
 0x1ab   :  { %v634_v25 = vrot.slane %v633_v22, 1 }
 0x1ad   :  { %v635_v27 = vadd.f32 %v634_v25, %v633_v22 }
 0x1af   :  { %v636_v5 = vadd.f32 %v635_v27, %v608_v26 }
 0x1b1   :  { %637 = vst [vmem:[#allocation3] sm:$0x1] %v636_v5  ;;  %v717_v10 = vld [vmem:[#allocation6] sm:$0x1] }
 0x1f8   :  { %v1391_v34 = vpop.xlane.xlu1 %465 }
 0x1f9   :  { %v472_v37 = vsub.f32 %v1328_v35, %v1391_v34 }
 0x1fa   :  { %v1395_v40 = vpop.xlane.xlu0 %425 }
 0x1fb   :  { %v477_v7 = vmul.f32 1.442695, %v472_v37  ;;  %v432_v49 = vsub.f32 %v1334_v21, %v1395_v40 }
 0x1fc   :  { %v1397_v42 = vpop.xlane.xlu1 %463 }
 0x1fd   :  { %969 = vpow2.f32 %v477_v7  ;;  %v471_v44 = vsub.f32 %v1340_v29, %v1397_v42  ;;  %v437_v29 = vmul.f32 1.442695, %v432_v49 }
 0x1ff   :  { %v475_v47 = vmul.f32 1.442695, %v471_v44  ;;  %v1401_v48 = vpop.xlane.xlu0 %423 }
 0x200   :  { %v431_v41 = vsub.f32 %v1354_v9, %v1401_v48  ;;  %v1407_v50 = vpop.xlane.xlu1 %467 }
 0x201   :  { %971 = vpow2.f32 %v475_v47  ;;  %v473_v35 = vsub.f32 %v1347_v32, %v1407_v50 }
 0x202   :  { %v435_v11 = vmul.f32 1.442695, %v431_v41 }
 0x203   :  { %v479_v51 = vmul.f32 1.442695, %v473_v35  ;;  %v1411_v45 = vpop.xlane.xlu0 %427 }
 0x204   :  { %973 = vpow2.f32 %v435_v11  ;;  %v433_v52 = vsub.f32 %v1369_v56, %v1411_v45  ;;  %v1415_v53 = vpop.xlane.xlu1 %469 }
 0x205   :  { %975 = vpow2.f32 %v479_v51  ;;  %v474_v21 = vsub.f32 %v1358_v33, %v1415_v53 }
 0x206   :  { %v439_v9 = vmul.f32 1.442695, %v433_v52  ;;  %977 = vpow2.f32 %v437_v29 }
 0x207   :  { %v970_v14 = vpop.eup %969  ;;  %v1419_v12 = vpop.xlane.xlu0 %429  ;;  %v481_v32 = vmul.f32 1.442695, %v474_v21 }
 0x208   :  { %v434_v13 = vsub.f32 %v1377_v58, %v1419_v12  ;;  %485 = vadd.xlane.f32.xlu1 %v970_v14  ;;  %979 = vpow2.f32 %v439_v9  ;;  %v712_v58 = vld [vmem:[#allocation3] sm:$0x1] }
 0x209   :  { %981 = vpow2.f32 %v481_v32 }
 0x20a   :  { %v441_v57 = vmul.f32 1.442695, %v434_v13 }
 0x20b   :  { %v972_v60 = vpop.eup %971 }
 0x20c   :  { %483 = vadd.xlane.f32.xlu0 %v972_v60  ;;  %983 = vpow2.f32 %v441_v57 }
 0x20d   :  { %985 = vlog2.f32 %v712_v58 }
 0x20e   :  { %v974_v56 = vpop.eup %973  ;;  %987 = vlog2.f32 %v717_v10  ;;  %v735_v10 = vld [vmem:[#allocation7] sm:$0x1] }
 0x20f   :  { %v976_v61 = vpop.eup %975  ;;  %vm736_vm7 = vcmp.gt.f32.partialorder %v735_v10, 0.0 }
 0x210   :  { %487 = vadd.xlane.f32.xlu1 %v976_v61  ;;  %443 = vadd.xlane.f32.xlu0 %v974_v56  ;;  %v978_v33 = vpop.eup %977 }
 0x212   :  { %v980_v62 = vpop.eup %979 }
 0x213   :  { %v982_v0 = vpop.eup %981 }
 0x214   :  { %445 = vadd.xlane.f32.xlu1 %v978_v33  ;;  %447 = vadd.xlane.f32.xlu0 %v980_v62 }
 0x216   :  { %v984_v1 = vpop.eup %983 }
 0x217   :  { %v986_v15 = vpop.eup %985 }
 0x218   :  { %489 = vadd.xlane.f32.xlu1 %v982_v0  ;;  %449 = vadd.xlane.f32.xlu0 %v984_v1  ;;  %v733_v0 = vld [vmem:[#allocation4] sm:$0x1] }
 0x219   :  { %vm734_vm3 = vcmp.gt.f32.partialorder %v733_v0, 0.0 }
 0x21a   :  { %vm737_vm9 = vmand %vm734_vm3, %vm736_vm7 }
 0x21c   :  { %393 = vadd.xlane.f32.xlu1 %v1221_v54  ;;  %391 = vadd.xlane.f32.xlu0 %v1223_v55  ;;  %v988_v55 = vpop.eup %987 }
 0x220   :  { %405 = vadd.xlane.f32.xlu1 %v1205_v38  ;;  %403 = vadd.xlane.f32.xlu0 %v1207_v39  ;;  %v714_v38 = vmul.f32 0.6931472, %v986_v15 }
 0x224   :  { %407 = vadd.xlane.f32.xlu1 %v1212_v43  ;;  %395 = vadd.xlane.f32.xlu0 %v1228_v59  ;;  %v719_v43 = vmul.f32 0.6931472, %v988_v55  ;;  %v715_v59 = vld [vmem:[#allocation2] sm:$0x1] }
 0x226   :  { %v721_v8 = vadd.f32 %v720_v17, %v719_v43 }
 0x228   :  { %409 = vadd.xlane.f32.xlu1 %v1216_v46  ;;  %397 = vadd.xlane.f32.xlu0 %v1232_v63  ;;  %v716_v46 = vadd.f32 %v715_v59, %v714_v38 }
 0x22a   :  { %v1431_v31 = vadd.f32 %v721_v8, %v716_v46 }
 0x22c   :  { %v724_v20 = vand.u32 2147483647, %v1431_v31 }
 0x22e   :  { %v725_v27 = vsub.f32 0.0, %v724_v20 }
 0x295   :  { %v486_v54 = vpop.xlane.xlu1 %485 }
 0x299   :  { %v484_v16 = vpop.xlane.xlu0 %483 }
 0x29a   :  { %989 = vlog2.f32 %v484_v16 }
 0x29b   :  { %991 = vlog2.f32 %v486_v54 }
 0x29d   :  { %v488_v39 = vpop.xlane.xlu1 %487  ;;  %v444_v36 = vpop.xlane.xlu0 %443 }
 0x29e   :  { %993 = vlog2.f32 %v488_v39 }
 0x29f   :  { %995 = vlog2.f32 %v444_v36 }
 0x2a1   :  { %v446_v63 = vpop.xlane.xlu1 %445  ;;  %v448_v18 = vpop.xlane.xlu0 %447 }
 0x2a2   :  { %997 = vlog2.f32 %v446_v63 }
 0x2a3   :  { %999 = vlog2.f32 %v448_v18 }
 0x2a4   :  { %v990_v19 = vpop.eup %989 }
 0x2a5   :  { %v490_v2 = vpop.xlane.xlu1 %489  ;;  %v450_v3 = vpop.xlane.xlu0 %449  ;;  %v492_v30 = vmul.f32 0.6931472, %v990_v19 }
 0x2a6   :  { %1001 = vlog2.f32 %v490_v2  ;;  %v992_v4 = vpop.eup %991 }
 0x2a7   :  { %1003 = vlog2.f32 %v450_v3  ;;  %v494_v26 = vmul.f32 0.6931472, %v992_v4  ;;  %v499_v37 = vadd.f32 %v492_v30, %v1397_v42  ;;  %v726_v42 = vmul.f32 1.442695, %v725_v27 }
 0x2a8   :  { %v994_v6 = vpop.eup %993 }
 0x2a9   :  { %v996_v22 = vpop.eup %995  ;;  %v394_v23 = vpop.xlane.xlu1 %393  ;;  %v496_v7 = vmul.f32 0.6931472, %v994_v6  ;;  %v500_v29 = vadd.f32 %v494_v26, %v1391_v34  ;;  %1005 = vpow2.f32 %v726_v42  ;;  %v738_v6 = vsel %vm737_vm9, 1.0, %v1116_v28 }
 0x2aa   :  { %v392_v24 = vpop.xlane.xlu0 %391  ;;  %v452_v25 = vmul.f32 0.6931472, %v996_v22  ;;  %vm400_vm2 = vcmp.gt.f32.partialorder %v394_v23, 0.0 }
 0x2ab   :  { %vm399_vm10 = vcmp.gt.f32.partialorder %v392_v24, 0.0 }
 0x2ac   :  { %v998_v5 = vpop.eup %997  ;;  %v459_v44 = vadd.f32 %v452_v25, %v1401_v48  ;;  %v501_v48 = vadd.f32 %v496_v7, %v1407_v50 }
 0x2ad   :  { %v1000_v47 = vpop.eup %999  ;;  %v454_v49 = vmul.f32 0.6931472, %v998_v5  ;;  %v406_v41 = vpop.xlane.xlu1 %405 }
 0x2ae   :  { %v404_v35 = vpop.xlane.xlu0 %403  ;;  %v1436_v11 = vadd.f32 %v499_v37, %v459_v44  ;;  %v456_v51 = vmul.f32 0.6931472, %v1000_v47  ;;  %vm412_vm12 = vcmp.gt.f32.partialorder %v406_v41, 0.0 }
 0x2af   :  { %vm411_vm13 = vcmp.gt.f32.partialorder %v404_v35, 0.0  ;;  %v460_v52 = vadd.f32 %v454_v49, %v1395_v40  ;;  %vm416_vm14 = vmand %vm400_vm2, %vm412_vm12  ;;  %vm740_vm2 = vcmask 1040384  }
 0x2b0   :  { %v1002_v21 = vpop.eup %1001  ;;  %v511_v9 = vand.u32 2147483647, %v1436_v11  ;;  %v461_v14 = vadd.f32 %v456_v51, %v1411_v45  ;;  %v1444_v32 = vsel %vm416_vm14, 1.0, %v1116_v28  ;;  %vm415_vm15 = vmand %vm399_vm10, %vm411_vm13  ;;  %v751_v30 = vsel %vm740_vm2, %v738_v6, 0.0 }
 0x2b1   :  { %v1004_v13 = vpop.eup %1003  ;;  %v1447_v57 = vadd.f32 %v500_v29, %v460_v52  ;;  %v498_v34 = vmul.f32 0.6931472, %v1002_v21  ;;  %v575_v40 = vsel %vm553_vm11, %v1444_v32, 0.0  ;;  %v1452_v60 = vsel %vm415_vm15, 1.0, %v1116_v28  ;;  %v408_v50 = vpop.xlane.xlu1 %407 }
 0x2b2   :  { %v396_v56 = vpop.xlane.xlu0 %395  ;;  %v515_v61 = vsub.f32 0.0, %v511_v9  ;;  %v1454_v33 = vadd.f32 %v501_v48, %v461_v14  ;;  %v458_v45 = vmul.f32 0.6931472, %v1004_v13  ;;  %v574_v62 = vsel %vm553_vm11, %v1452_v60, 0.0 }
 0x2b3   :  { %v512_v1 = vand.u32 2147483647, %v1447_v57  ;;  %v502_v58 = vadd.f32 %v498_v34, %v1415_v53  ;;  %vm413_vm0 = vcmp.gt.f32.partialorder %v408_v50, 0.0  ;;  %v576_v38 = vadd.f32 %v575_v40, %v574_v62  ;;  %v1006_v20 = vpop.eup %1005 }
 0x2b4   :  { %v519_v15 = vmul.f32 1.442695, %v515_v61  ;;  %v513_v54 = vand.u32 2147483647, %v1454_v33  ;;  %v462_v16 = vadd.f32 %v458_v45, %v1419_v12  ;;  %vm401_vm1 = vcmp.gt.f32.partialorder %v396_v56, 0.0 }
 0x2b5   :  { %v516_v55 = vsub.f32 0.0, %v512_v1  ;;  %v410_v39 = vpop.xlane.xlu1 %409  ;;  %vm417_vm4 = vmand %vm401_vm1, %vm413_vm0  ;;  %v728_v24 = vadd.f32 1.0, %v1006_v20  ;;  %v507_v44 = vmax.f32 %v1436_v11, 0.0  ;;  %v508_v29 = vmax.f32 %v1447_v57, 0.0 }
 0x2b6   :  { %v398_v36 = vpop.xlane.xlu0 %397  ;;  %1007 = vpow2.f32 %v519_v15  ;;  %v517_v43 = vsub.f32 0.0, %v513_v54  ;;  %v1462_v59 = vadd.f32 %v502_v58, %v462_v16  ;;  %vm414_vm5 = vcmp.gt.f32.partialorder %v410_v39, 0.0 }
 0x2b7   :  { %v521_v53 = vmul.f32 1.442695, %v516_v55  ;;  %v421_v46 = vsel %vm417_vm4, 1.0, %v1116_v28  ;;  %vm402_vm6 = vcmp.gt.f32.partialorder %v398_v36, 0.0  ;;  %v509_v21 = vmax.f32 %v1454_v33, 0.0 }
 0x2b8   :  { %v523_v17 = vmul.f32 1.442695, %v517_v43  ;;  %v514_v12 = vand.u32 2147483647, %v1462_v59  ;;  %v577_v63 = vsel %vm553_vm11, %v421_v46, 0.0  ;;  %vm418_vm8 = vmand %vm402_vm6, %vm414_vm5  ;;  %v510_v56 = vmax.f32 %v1462_v59, 0.0 }
 0x2b9   :  { %1009 = vpow2.f32 %v521_v53  ;;  %v422_v18 = vsel %vm418_vm8, 1.0, %v1116_v28  ;;  %v578_v8 = vadd.f32 %v577_v63, %v576_v38  ;;  %v723_v45 = vmax.f32 %v1431_v31, 0.0 }
 0x2ba   :  { %1011 = vpow2.f32 %v523_v17  ;;  %v518_v19 = vsub.f32 0.0, %v514_v12  ;;  %v579_v2 = vsel %vm553_vm11, %v422_v18, 0.0 }
 0x2bb   :  { %v580_v3 = vadd.f32 %v579_v2, %v578_v8 }
 0x2bc   :  { %v525_v4 = vmul.f32 1.442695, %v518_v19 }
 0x2bd   :  { %581 = vadd.xlane.f32.xlu1 %v580_v3 }
 0x2be   :  { %1013 = vpow2.f32 %v525_v4 }
 0x2c0   :  { %v1008_v22 = vpop.eup %1007 }
 0x2c1   :  { %v527_v23 = vadd.f32 1.0, %v1008_v22  ;;  %752 = vadd.xlane.f32.xlu1 %v751_v30 }
 0x2c3   :  { %v1010_v25 = vpop.eup %1009  ;;  %1015 = vlog2.f32 %v527_v23 }
 0x2c4   :  { %v1012_v26 = vpop.eup %1011  ;;  %v528_v27 = vadd.f32 1.0, %v1010_v25  ;;  %1017 = vlog2.f32 %v728_v24 }
 0x2c5   :  { %v529_v5 = vadd.f32 1.0, %v1012_v26 }
 0x2c6   :  { %1019 = vlog2.f32 %v528_v27 }
 0x2c7   :  { %1021 = vlog2.f32 %v529_v5 }
 0x2c8   :  { %v1014_v37 = vpop.eup %1013 }
 0x2c9   :  { %v530_v7 = vadd.f32 1.0, %v1014_v37 }
 0x2cb   :  { %1023 = vlog2.f32 %v530_v7 }
 0x2cd   :  { %v1016_v28 = vpop.eup %1015 }
 0x2ce   :  { %v532_v47 = vmul.f32 0.6931472, %v1016_v28  ;;  %v1018_v49 = vpop.eup %1017 }
 0x2cf   :  { %v730_v13 = vmul.f32 0.6931472, %v1018_v49 }
 0x2d0   :  { %v1020_v41 = vpop.eup %1019  ;;  %v539_v35 = vadd.f32 %v532_v47, %v507_v44 }
 0x2d1   :  { %v1022_v51 = vpop.eup %1021  ;;  %v534_v52 = vmul.f32 0.6931472, %v1020_v41  ;;  %v731_v1 = vadd.f32 %v730_v13, %v723_v45 }
 0x2d2   :  { %v544_v42 = vmul.f32 0.041666668, %v539_v35  ;;  %v536_v48 = vmul.f32 0.6931472, %v1022_v51 }
 0x2d3   :  { %v540_v9 = vadd.f32 %v534_v52, %v508_v29  ;;  %v732_v55 = vmul.f32 0.041666668, %v731_v1 }
 0x2d4   :  { %v541_v14 = vadd.f32 %v536_v48, %v509_v21  ;;  %v549_v50 = vmul.f32 %v544_v42, %v1452_v60 }
 0x2d5   :  { %v1024_v34 = vpop.eup %1023  ;;  %v545_v40 = vmul.f32 0.041666668, %v540_v9  ;;  %v739_v31 = vmul.f32 %v738_v6, %v732_v55 }
 0x2d6   :  { %v546_v11 = vmul.f32 0.041666668, %v541_v14  ;;  %v538_v61 = vmul.f32 0.6931472, %v1024_v34  ;;  %v554_v58 = vsel %vm553_vm11, %v549_v50, 0.0 }
 0x2d7   :  { %v550_v57 = vmul.f32 %v545_v40, %v1444_v32  ;;  %v741_v32 = vsel %vm740_vm2, %v739_v31, 0.0 }
 0x2d8   :  { %v551_v62 = vmul.f32 %v546_v11, %v421_v46  ;;  %v542_v0 = vadd.f32 %v538_v61, %v510_v56 }
 0x2d9   :  { %v555_v33 = vsel %vm553_vm11, %v550_v57, 0.0 }
 0x2da   :  { %v547_v10 = vmul.f32 0.041666668, %v542_v0  ;;  %v556_v15 = vadd.f32 %v555_v33, %v554_v58  ;;  %v557_v54 = vsel %vm553_vm11, %v551_v62, 0.0 }
 0x2dc   :  { %v552_v60 = vmul.f32 %v547_v10, %v422_v18  ;;  %v558_v16 = vadd.f32 %v557_v54, %v556_v15 }
 0x2de   :  { %v559_v38 = vsel %vm553_vm11, %v552_v60, 0.0 }
 0x2df   :  { %v560_v39 = vadd.f32 %v559_v38, %v558_v16 }
 0x2e1   :  { %561 = vadd.xlane.f32.xlu0 %v560_v39 }
 0x2e5   :  { %742 = vadd.xlane.f32.xlu0 %v741_v32 }
 0x34a   :  { %v582_v36 = vpop.xlane.xlu1 %581 }
 0x34b   :  { %v583_v43 = vrot.slane %v582_v36, 4 }
 0x34d   :  { %v584_v53 = vadd.f32 %v583_v43, %v582_v36 }
 0x34e   :  { %v753_v59 = vpop.xlane.xlu1 %752 }
 0x34f   :  { %v754_v46 = vrot.slane %v753_v59, 4  ;;  %v585_v17 = vrot.slane %v584_v53, 2 }
 0x351   :  { %v755_v12 = vadd.f32 %v754_v46, %v753_v59  ;;  %v586_v3 = vadd.f32 %v585_v17, %v584_v53 }
 0x353   :  { %v756_v19 = vrot.slane %v755_v12, 2  ;;  %v587_v23 = vrot.slane %v586_v3, 1 }
 0x355   :  { %v757_v22 = vadd.f32 %v756_v19, %v755_v12  ;;  %v588_v5 = vadd.f32 %v587_v23, %v586_v3 }
 0x357   :  { %v758_v37 = vrot.slane %v757_v22, 1 }
 0x359   :  { %v759_v44 = vadd.f32 %v758_v37, %v757_v22 }
 0x36e   :  { %v562_v63 = vpop.xlane.xlu0 %561 }
 0x36f   :  { %v563_v8 = vrot.slane %v562_v63, 4 }
 0x371   :  { %v564_v18 = vadd.f32 %v563_v8, %v562_v63 }
 0x372   :  { %v743_v2 = vpop.xlane.xlu0 %742 }
 0x373   :  { %v565_v4 = vrot.slane %v564_v18, 2  ;;  %v744_v20 = vrot.slane %v743_v2, 4 }
 0x375   :  { %v745_v6 = vadd.f32 %v744_v20, %v743_v2  ;;  %v566_v30 = vadd.f32 %v565_v4, %v564_v18 }
 0x377   :  { %v746_v24 = vrot.slane %v745_v6, 2  ;;  %v567_v25 = vrot.slane %v566_v30, 1 }
 0x379   :  { %v747_v26 = vadd.f32 %v746_v24, %v745_v6  ;;  %v568_v27 = vadd.f32 %v567_v25, %v566_v30 }
 0x37b   :  { %912 = vpush %v568_v27  ;;  %v748_v7 = vrot.slane %v747_v26, 1 }
 0x37c   :  { %914 = vpush %v588_v5 }
 0x37d   :  { %v749_v28 = vadd.f32 %v748_v7, %v747_v26 }
 0x37f   :  { %916 = vpush %v749_v28 }
 0x380   :  { %918 = vpush %v759_v44 }
 0x3ac   :  { %s913_s2 = spop %912 }
 0x3ad   :  { %s915_s21 = spop %914 }
 0x3ae   :  { %s768_s23 = smax.f32 %s1118_s22, %s915_s21 }
 0x3af   :  { %v769_v47 = vstv %s768_s23 }
 0x3b0   :  { %s917_s24 = spop %916 }
 0x3b1   :  { %s919_s25 = spop %918 }
 0x3b2   :  { %s761_s26 = smax.f32 %s1118_s22, %s919_s25 }
 0x3b3   :  { %v762_v49 = vstv %s761_s26 }
 0x3b4   :  { %1025 = vrcp.f32 %v762_v49 }
 0x3b5   :  { %1027 = vrcp.f32 %v769_v47 }
 0x3be   :  { %v1026_v41 = vpop.eup %1025 }
 0x3bf   :  { %v1028_v35 = vpop.eup %1027  ;;  %920 = vpush %v1026_v41 }
 0x3c0   :  { %922 = vpush %v1028_v35 }
 0x3f0   :  { %s921_s27 = spop %920 }
 0x3f1   :  { %s765_s28 = smul.f32 %s921_s27, %s917_s24  ;;  %s923_s29 = spop %922 }
 0x3f2   :  { %s772_s30 = smul.f32 %s923_s29, %s913_s2 }
 0x3f4   :  { %s773_s4 = sadd.f32 %s772_s30, %s765_s28 }
 0x3f6   :  { %s774_s5 = smul.f32 0.5, %s773_s4 }
 0x3f8   :  { %776 = sst [smem:[#allocation15]] %s774_s5 }
 0x3f9   :  { %1104 = shalt.err (!%p1101_p12)
}
 0x3fa   :  { %s1119_s12 = smov [#allocation15]  }
 0x3fb   :  { %784 = dma.smem_to_hbm %s1119_s12, 16, %s1499_s3, [#allocation11]  }
 0x3fc   :  { %1109 = dma.done.wait [#allocation11], 16  }
 0x3fd   :  { %1110 = vsyncadd [#allocation11], 4294967280 }
 0x3fe   :  { %788 = sfence }
 0x3ff   :  { %789 = vsyncpa [#allocation10], 1 }
 0x400   :  { %790 = vsyncpa [#allocation13], 1 }
 0x401   :  { %791 = vsyncpa [#allocation11], 1 }

</bundles_post_ra>
